<compile_context>
chip_gen: v6e
topology: v6e:2x2x1
jax: 0.10.0
libtpu: 0.0.40
codegen_flags: <defaults>
</compile_context>

<pallas_src>
import jax
import jax.numpy as jnp
from jax import lax
from jax.experimental import pallas as pl
from jax.experimental.pallas import tpu as pltpu

N_EMBD = 384      # module-level n_embd
N_HEAD = 6        # n_heads
HEAD_SIZE = 64    # head_size   (n_heads * head_size == n_embd)


def _mha_kernel(x_ref, wqkv_ref, wproj_ref, bproj_ref, o_ref):
    # x_ref:     (1, T, C)    one batch element
    # wqkv_ref:  (C, 3*NH*H)  fused [Wq_all | Wk_all | Wv_all], bf16
    # wproj_ref: (C, C)       output projection weight, bf16
    # bproj_ref: (1, C)       output projection bias, f32
    # o_ref:     (1, T, C)    lane-dense output (C = 384)
    x = x_ref[0].astype(jnp.bfloat16)                      # (T, C) bf16 MXU operand
    T = x.shape[0]
    nhh = N_HEAD * HEAD_SIZE

    # One wide QKV projection, f32 accumulation.
    qkv = jnp.dot(x, wqkv_ref[...], preferred_element_type=jnp.float32)   # (T, 3*NH*H)

    # Causal mask (row >= col), built once and reused by every head.
    row = lax.broadcasted_iota(jnp.int32, (T, T), 0)
    col = lax.broadcasted_iota(jnp.int32, (T, T), 1)
    causal = row >= col

    # NOTE: scaled by 1/sqrt(n_embd) (== channels), exactly as in the PyTorch module.
    scale = 1.0 / (N_EMBD ** 0.5)

    head_outs = []
    for h in range(N_HEAD):                                # static, unrolled
        q = qkv[:, h * HEAD_SIZE:(h + 1) * HEAD_SIZE].astype(jnp.bfloat16)
        k = qkv[:, nhh + h * HEAD_SIZE: nhh + (h + 1) * HEAD_SIZE].astype(jnp.bfloat16)
        v = qkv[:, 2 * nhh + h * HEAD_SIZE: 2 * nhh + (h + 1) * HEAD_SIZE].astype(jnp.bfloat16)

        # s = q @ k^T  (contract the head dim of both operands), f32 accumulate.
        s = lax.dot_general(q, k, (((1,), (1,)), ((), ())),
                            preferred_element_type=jnp.float32) * scale    # (T, T)
        s = jnp.where(causal, s, -jnp.inf)

        # numerically-stable softmax in f32; reciprocal goes to the EUP slot.
        s = s - jnp.max(s, axis=-1, keepdims=True)
        p = jnp.exp(s)
        p = p * pl.reciprocal(jnp.sum(p, axis=-1, keepdims=True), approx=True)

        # TODO(synk): training-mode dropout on the attention matrix not implemented
        # (eval mode == identity).
        head_outs.append(jnp.dot(p.astype(jnp.bfloat16), v,
                                 preferred_element_type=jnp.float32))      # (T, H)

    concat = jnp.concatenate(head_outs, axis=-1).astype(jnp.bfloat16)      # (T, NH*H)

    # TODO(synk): training-mode dropout before the projection not implemented.
    y = jnp.dot(concat, wproj_ref[...], preferred_element_type=jnp.float32)  # (T, C)
    y = y + bproj_ref[...]                                                   # bias (broadcast)
    o_ref[0] = y.astype(o_ref.dtype)


def multi_head_attention(x, w_q, w_k, w_v, w_proj, b_proj):
    """x: (B, T, C); w_q/w_k/w_v: (NH, C, H); w_proj: (C, C); b_proj: (C,)."""
    B, T, C = x.shape
    NH, _, H = w_q.shape
    assert C == N_EMBD and NH == N_HEAD and H == HEAD_SIZE and NH * H == C

    # Fuse every head's projection weights into one (C, 3*NH*H) bf16 matrix:
    # columns [0, NH*H) are Q (head-major), then K, then V.
    def _cat(w):   # (NH, C, H) -> (C, NH*H)
        return jnp.transpose(w, (1, 0, 2)).reshape(C, NH * H)

    w_qkv = jnp.concatenate([_cat(w_q), _cat(w_k), _cat(w_v)], axis=1).astype(jnp.bfloat16)
    w_proj_bf = w_proj.astype(jnp.bfloat16)
    b_proj2d = b_proj.reshape(1, C).astype(jnp.float32)

    return pl.pallas_call(
        _mha_kernel,
        out_shape=jax.ShapeDtypeStruct((B, T, C), x.dtype),
        grid_spec=pltpu.PrefetchScalarGridSpec(
            num_scalar_prefetch=0,
            grid=(B,),
            in_specs=[
                pl.BlockSpec((1, T, C), lambda b: (b, 0, 0)),
                pl.BlockSpec((C, 3 * NH * H), lambda b: (0, 0)),
                pl.BlockSpec((C, C), lambda b: (0, 0)),
                pl.BlockSpec((1, C), lambda b: (0, 0)),
            ],
            out_specs=pl.BlockSpec((1, T, C), lambda b: (b, 0, 0)),
        ),
        compiler_params=pltpu.CompilerParams(
            dimension_semantics=("parallel",)),
    )(x, w_qkv, w_proj_bf, b_proj2d)


def _reference(x, w_q, w_k, w_v, w_proj, b_proj):
    """Pure-JAX f32 reference matching the PyTorch module (eval mode)."""
    B, T, C = x.shape
    mask = jnp.tril(jnp.ones((T, T), dtype=bool))
    heads = []
    for h in range(w_q.shape[0]):
        k = x @ w_k[h]
        q = x @ w_q[h]
        v = x @ w_v[h]
        attn = (q @ jnp.swapaxes(k, -2, -1)) / (C ** 0.5)
        attn = jnp.where(mask, attn, -jnp.inf)
        attn = jax.nn.softmax(attn, axis=-1)
        heads.append(attn @ v)
    cat = jnp.concatenate(heads, axis=-1)
    return cat @ w_proj + b_proj


if __name__ == "__main__":
    key = jax.random.PRNGKey(0)
    k_x, k_q, k_k, k_v, k_p, k_b = jax.random.split(key, 6)

    B, T = 2, 16   # small seq length; context_length=256 only bounds T
    x = jax.random.normal(k_x, (B, T, N_EMBD), dtype=jnp.float32)

    # deterministic "nn.Linear"-style init: U(-1/sqrt(fan_in), 1/sqrt(fan_in))
    bound = 1.0 / (N_EMBD ** 0.5)
    w_q = jax.random.uniform(k_q, (N_HEAD, N_EMBD, HEAD_SIZE), jnp.float32, -bound, bound)
    w_k = jax.random.uniform(k_k, (N_HEAD, N_EMBD, HEAD_SIZE), jnp.float32, -bound, bound)
    w_v = jax.random.uniform(k_v, (N_HEAD, N_EMBD, HEAD_SIZE), jnp.float32, -bound, bound)
    w_proj = jax.random.uniform(k_p, (N_EMBD, N_EMBD), jnp.float32, -bound, bound)
    b_proj = jax.random.uniform(k_b, (N_EMBD,), jnp.float32, -bound, bound)

    out = multi_head_attention(x, w_q, w_k, w_v, w_proj, b_proj)
    out = jax.block_until_ready(out)

    ref = _reference(x, w_q, w_k, w_v, w_proj, b_proj)
    assert out.shape == (B, T, N_EMBD)
    # bf16 MXU operands with f32 accumulation -> relax tolerance vs f32 reference.
    assert jnp.allclose(out, ref, atol=3e-2, rtol=3e-2), \
        f"max abs err = {jnp.max(jnp.abs(out - ref))}"

    print("KERNEL_OK")
</pallas_src>

<mosaic_0001>
module attributes {stable_mosaic.version = 11 : i64} {
  func.func @_mha_kernel(%arg0: i32, %arg1: memref<1x16x384xf32, #tpu.memory_space<vmem>>, %arg2: memref<384x1152xbf16, #tpu.memory_space<vmem>>, %arg3: memref<384x384xbf16, #tpu.memory_space<vmem>>, %arg4: memref<1x384xf32, #tpu.memory_space<vmem>>, %arg5: memref<1x16x384xf32, #tpu.memory_space<vmem>>) attributes {dimension_semantics = [#tpu.dimension_semantics<parallel>], iteration_bounds = array<i64: 2>, scalar_prefetch = 0 : i64, scratch_operands = 0 : i64, tpu.core_type = #tpu.core_type<tc>, window_params = [{transform_indices = @transform_0, window_bounds = array<i64: 1, 16, 384>}, {pipeline_mode = #tpu.pipeline_mode<synchronous>, transform_indices = @transform_1, window_bounds = array<i64: 384, 1152>}, {pipeline_mode = #tpu.pipeline_mode<synchronous>, transform_indices = @transform_2, window_bounds = array<i64: 384, 384>}, {pipeline_mode = #tpu.pipeline_mode<synchronous>, transform_indices = @transform_3, window_bounds = array<i64: 1, 384>}, {transform_indices = @transform_4, window_bounds = array<i64: 1, 16, 384>}]} {
    %c0 = arith.constant 0 : index
    %c0_0 = arith.constant 0 : index
    %c0_1 = arith.constant 0 : index
    %0 = vector.load %arg1[%c0, %c0_0, %c0_1] : memref<1x16x384xf32, #tpu.memory_space<vmem>>, vector<1x16x384xf32>
    %1 = vector.shape_cast %0 : vector<1x16x384xf32> to vector<16x384xf32>
    %2 = arith.truncf %1 : vector<16x384xf32> to vector<16x384xbf16>
    %c0_2 = arith.constant 0 : index
    %c0_3 = arith.constant 0 : index
    %3 = vector.load %arg2[%c0_2, %c0_3] : memref<384x1152xbf16, #tpu.memory_space<vmem>>, vector<384x1152xbf16>
    %cst = arith.constant dense<0.000000e+00> : vector<16x1152xf32>
    %4 = tpu.matmul %2, %3, %cst {dimension_numbers = #tpu.dot_dimension_numbers<[1], [0], [0], [1], [0, 0, 1, 1], [], []>} : vector<16x384xbf16>, vector<384x1152xbf16>, vector<16x1152xf32> -> vector<16x1152xf32>
    %5 = tpu.iota {dimensions = array<i32: 0>} : vector<16x16xi32>
    %6 = tpu.iota {dimensions = array<i32: 1>} : vector<16x16xi32>
    %7 = arith.cmpi sge, %5, %6 : vector<16x16xi32>
    %8 = vector.extract_strided_slice %4 {offsets = [0, 0], sizes = [16, 64], strides = [1, 1]} : vector<16x1152xf32> to vector<16x64xf32>
    %9 = arith.truncf %8 : vector<16x64xf32> to vector<16x64xbf16>
    %10 = vector.extract_strided_slice %4 {offsets = [0, 384], sizes = [16, 64], strides = [1, 1]} : vector<16x1152xf32> to vector<16x64xf32>
    %11 = arith.truncf %10 : vector<16x64xf32> to vector<16x64xbf16>
    %12 = vector.extract_strided_slice %4 {offsets = [0, 768], sizes = [16, 64], strides = [1, 1]} : vector<16x1152xf32> to vector<16x64xf32>
    %13 = arith.truncf %12 : vector<16x64xf32> to vector<16x64xbf16>
    %cst_4 = arith.constant dense<0.000000e+00> : vector<16x16xf32>
    %14 = tpu.matmul %9, %11, %cst_4 {dimension_numbers = #tpu.dot_dimension_numbers<[1], [1], [0], [0], [0, 0, 1, 0], [], []>} : vector<16x64xbf16>, vector<16x64xbf16>, vector<16x16xf32> -> vector<16x16xf32>
    %cst_5 = arith.constant 0.0510310382 : f32
    %15 = vector.broadcast %cst_5 : f32 to vector<16x16xf32>
    %16 = arith.mulf %14, %15 : vector<16x16xf32>
    %cst_6 = arith.constant 0xFF800000 : f32
    %17 = vector.broadcast %cst_6 : f32 to vector<16x16xf32>
    %18 = arith.select %7, %16, %17 : vector<16x16xi1>, vector<16x16xf32>
    %cst_7 = arith.constant dense<0xFF800000> : vector<16xf32>
    %19 = vector.multi_reduction <maximumf>, %18, %cst_7 [1] : vector<16x16xf32> to vector<16xf32>
    %20 = vector.shape_cast %19 : vector<16xf32> to vector<16x1xf32>
    %21 = vector.broadcast %20 : vector<16x1xf32> to vector<16x16xf32>
    %22 = arith.subf %18, %21 : vector<16x16xf32>
    %23 = math.exp %22 : vector<16x16xf32>
    %cst_8 = arith.constant dense<0.000000e+00> : vector<16xf32>
    %24 = vector.multi_reduction <add>, %23, %cst_8 [1] : vector<16x16xf32> to vector<16xf32>
    %25 = vector.shape_cast %24 : vector<16xf32> to vector<16x1xf32>
    %26 = tpu.reciprocal %25 {approx = true} : vector<16x1xf32> -> vector<16x1xf32>
    %27 = vector.broadcast %26 : vector<16x1xf32> to vector<16x16xf32>
    %28 = arith.mulf %23, %27 : vector<16x16xf32>
    %29 = arith.truncf %28 : vector<16x16xf32> to vector<16x16xbf16>
    %cst_9 = arith.constant dense<0.000000e+00> : vector<16x64xf32>
    %30 = tpu.matmul %29, %13, %cst_9 {dimension_numbers = #tpu.dot_dimension_numbers<[1], [0], [0], [1], [0, 0, 1, 1], [], []>} : vector<16x16xbf16>, vector<16x64xbf16>, vector<16x64xf32> -> vector<16x64xf32>
    %31 = vector.extract_strided_slice %4 {offsets = [0, 64], sizes = [16, 64], strides = [1, 1]} : vector<16x1152xf32> to vector<16x64xf32>
    %32 = arith.truncf %31 : vector<16x64xf32> to vector<16x64xbf16>
    %33 = vector.extract_strided_slice %4 {offsets = [0, 448], sizes = [16, 64], strides = [1, 1]} : vector<16x1152xf32> to vector<16x64xf32>
    %34 = arith.truncf %33 : vector<16x64xf32> to vector<16x64xbf16>
    %35 = vector.extract_strided_slice %4 {offsets = [0, 832], sizes = [16, 64], strides = [1, 1]} : vector<16x1152xf32> to vector<16x64xf32>
    %36 = arith.truncf %35 : vector<16x64xf32> to vector<16x64xbf16>
    %cst_10 = arith.constant dense<0.000000e+00> : vector<16x16xf32>
    %37 = tpu.matmul %32, %34, %cst_10 {dimension_numbers = #tpu.dot_dimension_numbers<[1], [1], [0], [0], [0, 0, 1, 0], [], []>} : vector<16x64xbf16>, vector<16x64xbf16>, vector<16x16xf32> -> vector<16x16xf32>
    %cst_11 = arith.constant 0.0510310382 : f32
    %38 = vector.broadcast %cst_11 : f32 to vector<16x16xf32>
    %39 = arith.mulf %37, %38 : vector<16x16xf32>
    %cst_12 = arith.constant 0xFF800000 : f32
    %40 = vector.broadcast %cst_12 : f32 to vector<16x16xf32>
    %41 = arith.select %7, %39, %40 : vector<16x16xi1>, vector<16x16xf32>
    %cst_13 = arith.constant dense<0xFF800000> : vector<16xf32>
    %42 = vector.multi_reduction <maximumf>, %41, %cst_13 [1] : vector<16x16xf32> to vector<16xf32>
    %43 = vector.shape_cast %42 : vector<16xf32> to vector<16x1xf32>
    %44 = vector.broadcast %43 : vector<16x1xf32> to vector<16x16xf32>
    %45 = arith.subf %41, %44 : vector<16x16xf32>
    %46 = math.exp %45 : vector<16x16xf32>
    %cst_14 = arith.constant dense<0.000000e+00> : vector<16xf32>
    %47 = vector.multi_reduction <add>, %46, %cst_14 [1] : vector<16x16xf32> to vector<16xf32>
    %48 = vector.shape_cast %47 : vector<16xf32> to vector<16x1xf32>
    %49 = tpu.reciprocal %48 {approx = true} : vector<16x1xf32> -> vector<16x1xf32>
    %50 = vector.broadcast %49 : vector<16x1xf32> to vector<16x16xf32>
    %51 = arith.mulf %46, %50 : vector<16x16xf32>
    %52 = arith.truncf %51 : vector<16x16xf32> to vector<16x16xbf16>
    %cst_15 = arith.constant dense<0.000000e+00> : vector<16x64xf32>
    %53 = tpu.matmul %52, %36, %cst_15 {dimension_numbers = #tpu.dot_dimension_numbers<[1], [0], [0], [1], [0, 0, 1, 1], [], []>} : vector<16x16xbf16>, vector<16x64xbf16>, vector<16x64xf32> -> vector<16x64xf32>
    %54 = vector.extract_strided_slice %4 {offsets = [0, 128], sizes = [16, 64], strides = [1, 1]} : vector<16x1152xf32> to vector<16x64xf32>
    %55 = arith.truncf %54 : vector<16x64xf32> to vector<16x64xbf16>
    %56 = vector.extract_strided_slice %4 {offsets = [0, 512], sizes = [16, 64], strides = [1, 1]} : vector<16x1152xf32> to vector<16x64xf32>
    %57 = arith.truncf %56 : vector<16x64xf32> to vector<16x64xbf16>
    %58 = vector.extract_strided_slice %4 {offsets = [0, 896], sizes = [16, 64], strides = [1, 1]} : vector<16x1152xf32> to vector<16x64xf32>
    %59 = arith.truncf %58 : vector<16x64xf32> to vector<16x64xbf16>
    %cst_16 = arith.constant dense<0.000000e+00> : vector<16x16xf32>
    %60 = tpu.matmul %55, %57, %cst_16 {dimension_numbers = #tpu.dot_dimension_numbers<[1], [1], [0], [0], [0, 0, 1, 0], [], []>} : vector<16x64xbf16>, vector<16x64xbf16>, vector<16x16xf32> -> vector<16x16xf32>
    %cst_17 = arith.constant 0.0510310382 : f32
    %61 = vector.broadcast %cst_17 : f32 to vector<16x16xf32>
    %62 = arith.mulf %60, %61 : vector<16x16xf32>
    %cst_18 = arith.constant 0xFF800000 : f32
    %63 = vector.broadcast %cst_18 : f32 to vector<16x16xf32>
    %64 = arith.select %7, %62, %63 : vector<16x16xi1>, vector<16x16xf32>
    %cst_19 = arith.constant dense<0xFF800000> : vector<16xf32>
    %65 = vector.multi_reduction <maximumf>, %64, %cst_19 [1] : vector<16x16xf32> to vector<16xf32>
    %66 = vector.shape_cast %65 : vector<16xf32> to vector<16x1xf32>
    %67 = vector.broadcast %66 : vector<16x1xf32> to vector<16x16xf32>
    %68 = arith.subf %64, %67 : vector<16x16xf32>
    %69 = math.exp %68 : vector<16x16xf32>
    %cst_20 = arith.constant dense<0.000000e+00> : vector<16xf32>
    %70 = vector.multi_reduction <add>, %69, %cst_20 [1] : vector<16x16xf32> to vector<16xf32>
    %71 = vector.shape_cast %70 : vector<16xf32> to vector<16x1xf32>
    %72 = tpu.reciprocal %71 {approx = true} : vector<16x1xf32> -> vector<16x1xf32>
    %73 = vector.broadcast %72 : vector<16x1xf32> to vector<16x16xf32>
    %74 = arith.mulf %69, %73 : vector<16x16xf32>
    %75 = arith.truncf %74 : vector<16x16xf32> to vector<16x16xbf16>
    %cst_21 = arith.constant dense<0.000000e+00> : vector<16x64xf32>
    %76 = tpu.matmul %75, %59, %cst_21 {dimension_numbers = #tpu.dot_dimension_numbers<[1], [0], [0], [1], [0, 0, 1, 1], [], []>} : vector<16x16xbf16>, vector<16x64xbf16>, vector<16x64xf32> -> vector<16x64xf32>
    %77 = vector.extract_strided_slice %4 {offsets = [0, 192], sizes = [16, 64], strides = [1, 1]} : vector<16x1152xf32> to vector<16x64xf32>
    %78 = arith.truncf %77 : vector<16x64xf32> to vector<16x64xbf16>
    %79 = vector.extract_strided_slice %4 {offsets = [0, 576], sizes = [16, 64], strides = [1, 1]} : vector<16x1152xf32> to vector<16x64xf32>
    %80 = arith.truncf %79 : vector<16x64xf32> to vector<16x64xbf16>
    %81 = vector.extract_strided_slice %4 {offsets = [0, 960], sizes = [16, 64], strides = [1, 1]} : vector<16x1152xf32> to vector<16x64xf32>
    %82 = arith.truncf %81 : vector<16x64xf32> to vector<16x64xbf16>
    %cst_22 = arith.constant dense<0.000000e+00> : vector<16x16xf32>
    %83 = tpu.matmul %78, %80, %cst_22 {dimension_numbers = #tpu.dot_dimension_numbers<[1], [1], [0], [0], [0, 0, 1, 0], [], []>} : vector<16x64xbf16>, vector<16x64xbf16>, vector<16x16xf32> -> vector<16x16xf32>
    %cst_23 = arith.constant 0.0510310382 : f32
    %84 = vector.broadcast %cst_23 : f32 to vector<16x16xf32>
    %85 = arith.mulf %83, %84 : vector<16x16xf32>
    %cst_24 = arith.constant 0xFF800000 : f32
    %86 = vector.broadcast %cst_24 : f32 to vector<16x16xf32>
    %87 = arith.select %7, %85, %86 : vector<16x16xi1>, vector<16x16xf32>
    %cst_25 = arith.constant dense<0xFF800000> : vector<16xf32>
    %88 = vector.multi_reduction <maximumf>, %87, %cst_25 [1] : vector<16x16xf32> to vector<16xf32>
    %89 = vector.shape_cast %88 : vector<16xf32> to vector<16x1xf32>
    %90 = vector.broadcast %89 : vector<16x1xf32> to vector<16x16xf32>
    %91 = arith.subf %87, %90 : vector<16x16xf32>
    %92 = math.exp %91 : vector<16x16xf32>
    %cst_26 = arith.constant dense<0.000000e+00> : vector<16xf32>
    %93 = vector.multi_reduction <add>, %92, %cst_26 [1] : vector<16x16xf32> to vector<16xf32>
    %94 = vector.shape_cast %93 : vector<16xf32> to vector<16x1xf32>
    %95 = tpu.reciprocal %94 {approx = true} : vector<16x1xf32> -> vector<16x1xf32>
    %96 = vector.broadcast %95 : vector<16x1xf32> to vector<16x16xf32>
    %97 = arith.mulf %92, %96 : vector<16x16xf32>
    %98 = arith.truncf %97 : vector<16x16xf32> to vector<16x16xbf16>
    %cst_27 = arith.constant dense<0.000000e+00> : vector<16x64xf32>
    %99 = tpu.matmul %98, %82, %cst_27 {dimension_numbers = #tpu.dot_dimension_numbers<[1], [0], [0], [1], [0, 0, 1, 1], [], []>} : vector<16x16xbf16>, vector<16x64xbf16>, vector<16x64xf32> -> vector<16x64xf32>
    %100 = vector.extract_strided_slice %4 {offsets = [0, 256], sizes = [16, 64], strides = [1, 1]} : vector<16x1152xf32> to vector<16x64xf32>
    %101 = arith.truncf %100 : vector<16x64xf32> to vector<16x64xbf16>
    %102 = vector.extract_strided_slice %4 {offsets = [0, 640], sizes = [16, 64], strides = [1, 1]} : vector<16x1152xf32> to vector<16x64xf32>
    %103 = arith.truncf %102 : vector<16x64xf32> to vector<16x64xbf16>
    %104 = vector.extract_strided_slice %4 {offsets = [0, 1024], sizes = [16, 64], strides = [1, 1]} : vector<16x1152xf32> to vector<16x64xf32>
    %105 = arith.truncf %104 : vector<16x64xf32> to vector<16x64xbf16>
    %cst_28 = arith.constant dense<0.000000e+00> : vector<16x16xf32>
    %106 = tpu.matmul %101, %103, %cst_28 {dimension_numbers = #tpu.dot_dimension_numbers<[1], [1], [0], [0], [0, 0, 1, 0], [], []>} : vector<16x64xbf16>, vector<16x64xbf16>, vector<16x16xf32> -> vector<16x16xf32>
    %cst_29 = arith.constant 0.0510310382 : f32
    %107 = vector.broadcast %cst_29 : f32 to vector<16x16xf32>
    %108 = arith.mulf %106, %107 : vector<16x16xf32>
    %cst_30 = arith.constant 0xFF800000 : f32
    %109 = vector.broadcast %cst_30 : f32 to vector<16x16xf32>
    %110 = arith.select %7, %108, %109 : vector<16x16xi1>, vector<16x16xf32>
    %cst_31 = arith.constant dense<0xFF800000> : vector<16xf32>
    %111 = vector.multi_reduction <maximumf>, %110, %cst_31 [1] : vector<16x16xf32> to vector<16xf32>
    %112 = vector.shape_cast %111 : vector<16xf32> to vector<16x1xf32>
    %113 = vector.broadcast %112 : vector<16x1xf32> to vector<16x16xf32>
    %114 = arith.subf %110, %113 : vector<16x16xf32>
    %115 = math.exp %114 : vector<16x16xf32>
    %cst_32 = arith.constant dense<0.000000e+00> : vector<16xf32>
    %116 = vector.multi_reduction <add>, %115, %cst_32 [1] : vector<16x16xf32> to vector<16xf32>
    %117 = vector.shape_cast %116 : vector<16xf32> to vector<16x1xf32>
    %118 = tpu.reciprocal %117 {approx = true} : vector<16x1xf32> -> vector<16x1xf32>
    %119 = vector.broadcast %118 : vector<16x1xf32> to vector<16x16xf32>
    %120 = arith.mulf %115, %119 : vector<16x16xf32>
    %121 = arith.truncf %120 : vector<16x16xf32> to vector<16x16xbf16>
    %cst_33 = arith.constant dense<0.000000e+00> : vector<16x64xf32>
    %122 = tpu.matmul %121, %105, %cst_33 {dimension_numbers = #tpu.dot_dimension_numbers<[1], [0], [0], [1], [0, 0, 1, 1], [], []>} : vector<16x16xbf16>, vector<16x64xbf16>, vector<16x64xf32> -> vector<16x64xf32>
    %123 = vector.extract_strided_slice %4 {offsets = [0, 320], sizes = [16, 64], strides = [1, 1]} : vector<16x1152xf32> to vector<16x64xf32>
    %124 = arith.truncf %123 : vector<16x64xf32> to vector<16x64xbf16>
    %125 = vector.extract_strided_slice %4 {offsets = [0, 704], sizes = [16, 64], strides = [1, 1]} : vector<16x1152xf32> to vector<16x64xf32>
    %126 = arith.truncf %125 : vector<16x64xf32> to vector<16x64xbf16>
    %127 = vector.extract_strided_slice %4 {offsets = [0, 1088], sizes = [16, 64], strides = [1, 1]} : vector<16x1152xf32> to vector<16x64xf32>
    %128 = arith.truncf %127 : vector<16x64xf32> to vector<16x64xbf16>
    %cst_34 = arith.constant dense<0.000000e+00> : vector<16x16xf32>
    %129 = tpu.matmul %124, %126, %cst_34 {dimension_numbers = #tpu.dot_dimension_numbers<[1], [1], [0], [0], [0, 0, 1, 0], [], []>} : vector<16x64xbf16>, vector<16x64xbf16>, vector<16x16xf32> -> vector<16x16xf32>
    %cst_35 = arith.constant 0.0510310382 : f32
    %130 = vector.broadcast %cst_35 : f32 to vector<16x16xf32>
    %131 = arith.mulf %129, %130 : vector<16x16xf32>
    %cst_36 = arith.constant 0xFF800000 : f32
    %132 = vector.broadcast %cst_36 : f32 to vector<16x16xf32>
    %133 = arith.select %7, %131, %132 : vector<16x16xi1>, vector<16x16xf32>
    %cst_37 = arith.constant dense<0xFF800000> : vector<16xf32>
    %134 = vector.multi_reduction <maximumf>, %133, %cst_37 [1] : vector<16x16xf32> to vector<16xf32>
    %135 = vector.shape_cast %134 : vector<16xf32> to vector<16x1xf32>
    %136 = vector.broadcast %135 : vector<16x1xf32> to vector<16x16xf32>
    %137 = arith.subf %133, %136 : vector<16x16xf32>
    %138 = math.exp %137 : vector<16x16xf32>
    %cst_38 = arith.constant dense<0.000000e+00> : vector<16xf32>
    %139 = vector.multi_reduction <add>, %138, %cst_38 [1] : vector<16x16xf32> to vector<16xf32>
    %140 = vector.shape_cast %139 : vector<16xf32> to vector<16x1xf32>
    %141 = tpu.reciprocal %140 {approx = true} : vector<16x1xf32> -> vector<16x1xf32>
    %142 = vector.broadcast %141 : vector<16x1xf32> to vector<16x16xf32>
    %143 = arith.mulf %138, %142 : vector<16x16xf32>
    %144 = arith.truncf %143 : vector<16x16xf32> to vector<16x16xbf16>
    %cst_39 = arith.constant dense<0.000000e+00> : vector<16x64xf32>
    %145 = tpu.matmul %144, %128, %cst_39 {dimension_numbers = #tpu.dot_dimension_numbers<[1], [0], [0], [1], [0, 0, 1, 1], [], []>} : vector<16x16xbf16>, vector<16x64xbf16>, vector<16x64xf32> -> vector<16x64xf32>
    %146 = tpu.concatenate %30, %53, %76, %99, %122, %145 in 1 : vector<16x64xf32>, vector<16x64xf32>, vector<16x64xf32>, vector<16x64xf32>, vector<16x64xf32>, vector<16x64xf32> -> vector<16x384xf32>
    %147 = arith.truncf %146 : vector<16x384xf32> to vector<16x384xbf16>
    %c0_40 = arith.constant 0 : index
    %c0_41 = arith.constant 0 : index
    %148 = vector.load %arg3[%c0_40, %c0_41] : memref<384x384xbf16, #tpu.memory_space<vmem>>, vector<384x384xbf16>
    %cst_42 = arith.constant dense<0.000000e+00> : vector<16x384xf32>
    %149 = tpu.matmul %147, %148, %cst_42 {dimension_numbers = #tpu.dot_dimension_numbers<[1], [0], [0], [1], [0, 0, 1, 1], [], []>} : vector<16x384xbf16>, vector<384x384xbf16>, vector<16x384xf32> -> vector<16x384xf32>
    %c0_43 = arith.constant 0 : index
    %c0_44 = arith.constant 0 : index
    %150 = vector.load %arg4[%c0_43, %c0_44] : memref<1x384xf32, #tpu.memory_space<vmem>>, vector<1x384xf32>
    %151 = vector.broadcast %150 : vector<1x384xf32> to vector<16x384xf32>
    %152 = arith.addf %149, %151 : vector<16x384xf32>
    %c0_45 = arith.constant 0 : index
    %c0_46 = arith.constant 0 : index
    %c0_47 = arith.constant 0 : index
    %153 = vector.load %arg5[%c0_45, %c0_46, %c0_47] : memref<1x16x384xf32, #tpu.memory_space<vmem>>, vector<1x16x384xf32>
    %154 = vector.shape_cast %153 : vector<1x16x384xf32> to vector<16x384xf32>
    %155 = vector.shape_cast %152 : vector<16x384xf32> to vector<1x16x384xf32>
    tpu.vector_store %arg5[%c0_45, %c0_46, %c0_47], %155 {strides = array<i32>} : memref<1x16x384xf32, #tpu.memory_space<vmem>>, vector<1x16x384xf32>,
    return
  }
  func.func @transform_0(%arg0: i32) -> (i32, i32, i32) {
    %c0_i32 = arith.constant 0 : i32
    %c0_i32_0 = arith.constant 0 : i32
    %c0_i32_1 = arith.constant 0 : i32
    return %arg0, %c0_i32, %c0_i32_0 : i32, i32, i32
  }
  func.func @transform_1(%arg0: i32) -> (i32, i32) {
    %c0_i32 = arith.constant 0 : i32
    %c0_i32_0 = arith.constant 0 : i32
    %c0_i32_1 = arith.constant 0 : i32
    return %c0_i32, %c0_i32_0 : i32, i32
  }
  func.func @transform_2(%arg0: i32) -> (i32, i32) {
    %c0_i32 = arith.constant 0 : i32
    %c0_i32_0 = arith.constant 0 : i32
    %c0_i32_1 = arith.constant 0 : i32
    return %c0_i32, %c0_i32_0 : i32, i32
  }
  func.func @transform_3(%arg0: i32) -> (i32, i32) {
    %c0_i32 = arith.constant 0 : i32
    %c0_i32_0 = arith.constant 0 : i32
    %c0_i32_1 = arith.constant 0 : i32
    return %c0_i32, %c0_i32_0 : i32, i32
  }
  func.func @transform_4(%arg0: i32) -> (i32, i32, i32) {
    %c0_i32 = arith.constant 0 : i32
    %c0_i32_0 = arith.constant 0 : i32
    %c0_i32_1 = arith.constant 0 : i32
    return %arg0, %c0_i32, %c0_i32_0 : i32, i32, i32
  }
}

</mosaic_0001>

<bundles_post_ra>
// kernel: tpu_custom_call.1
= control target key start
LH: loop header
LB: loop body
LE: loop exit
PB: predicated region body
PF: predicated region fallthrough
CT: control target
= control target key end

     0   :  { %9 = vsyncpa [#allocation3], 0  ;;  %s5339_s0 = inlined_call_operand.hbm [shape: f32[2,16,384], index: 0, kind: input, shape index: {}]   ;;  %s5340_s1 = inlined_call_operand.hbm [shape: bf16[384,1152], index: 1, kind: input, shape index: {}]   ;;  %s5341_s2 = inlined_call_operand.hbm [shape: bf16[384,384], index: 2, kind: input, shape index: {}]   ;;  %s5342_s3 = inlined_call_operand.vmem [shape: f32[1,384], index: 3, kind: input, shape index: {}]   ;;  %s5343_s4 = inlined_call_operand.hbm [shape: f32[2,16,384], index: 4, kind: output, shape index: {}]  }
   0x1   :  { %11 = vsyncpa [#allocation3 + $0x1], 0 }
   0x2   :  { %12 = vsyncpa [#allocation6], 0 }
   0x3   :  { %13 = vsyncpa [#allocation4], 0 }
   0x4   :  { %15 = vsyncpa [#allocation4 + $0x1], 0  ;;  %s4846_s15 = smov 0   ;;  %s4848_s16 = smov 0  }
   0x5   :  { %s4850_s17 = smov 0   ;;  %s4852_s18 = smov 0  }
   0x6 LB: > { %s4867_s19 = sadd.s32 4294967295, %s4803_s18   ;;  %s3591_s20 = sadd.s32 4294967294, %s4803_s18   ;;  %s4803_s18 = sphi %s4852_s18, %s5369_s18   ;;  %s4799_s17 = sphi %s4850_s17, %s5368_s17   ;;  %s4795_s16 = sphi %s4848_s16, %s5367_s16   ;;  %s4791_s15 = sphi %s4846_s15, %s5366_s15  }
   0x7   : > { %p41_p0 = scmp.ne.s32.totalorder %s4795_s16, %s4791_s15  ;;  %p5344_p1 = scmp.eq.s32.totalorder %s4867_s19, 0 }
   0x8   : > { %p134_p3 = scmp.eq.s32.totalorder %s3591_s20, 1  ;;  %p3592_p5 = scmp.ge.s32.totalorder %s4803_s18, 1 }
   0x9   : > { %p4876_p4 = por %p5344_p1, %p41_p0  ;;  %p141_p7 = scmp.lt.s32.totalorder %s4803_s18, 3 }
   0xa   : > { %p4881_p6 = por %p134_p3, %p41_p0  ;;  %s4805_s24 = smov [#allocation5]  }
   0xb   : > { %s5348_s21 = scalar_select %p4876_p4, 1, 0 }
   0xc   : > { %s5349_s22 = scalar_select %p4881_p6, 1, 0 }
   0xd   : > { %p4886_p8 = pnand %p3592_p5, %p141_p7  ;;  %s153_s25 = sshll.u32 %s4805_s24, 4  ;;  %s154_s25 = int_to_ptr.vmem [resolvable:$true] %s153_s25 }
   0xe   : > { %s4806_s27 = smov [#allocation7]   ;;  %s4666_s29 = scalar_lea.vmem %s154_s25, 27648 }
   0xf   : > { %s5350_s23 = scalar_select %p4886_p8, 1, 0 }
  0x10   : > { %p4117_p9 = pneg %p4886_p8  ;;  %s166_s28 = sshll.u32 %s4806_s27, 4  ;;  %s167_s28 = int_to_ptr.vmem [resolvable:$true] %s166_s28 }
  0x11   : > { %p4667_p13 = scmp.ne.s32.totalorder %s154_s25, %s4666_s29  ;;  %p4674_p5 = scmp.lt.s32.totalorder %s154_s25, %s154_s25 }
  0x12   : > { %p4895_p11 = pnand %p4117_p9, %p5344_p1  ;;  %p4675_p7 = scmp.lt.s32.totalorder %s4666_s29, %s4666_s29 }
  0x14   : > { %p4657_p12 = pneg %p4895_p11  ;;  %p4676_p10 = por %p4675_p7, %p4674_p5 }
  0x16   : > { %p4669_p0 = pnand %p4667_p13, %p4657_p12 }
  0x18   : > { %p4670_p3 = pneg %p4669_p0 }
  0x1a   : > { %p4677_p9 = pnand %p4676_p10, %p4670_p3 }
  0x1c   : > { %4680 = shalt.err (!%p4677_p9)
}
  0x1d   : > { %s4807_s30 = smov 576   ;;  %s4808_s5 = smov 36  }
  0x1e   : > { %4120 = dma.hbm_to_vmem [thread:$0]  (!%p4895_p11), %s5340_s1, 27648, %s154_s25, [#allocation6], %s4807_s30, %s4807_s30, %s4808_s5  }
  0x1f   : > { %s4692_s8 = scalar_lea.vmem %s167_s28, 9216  ;;  %p4700_p2 = scmp.lt.s32.totalorder %s167_s28, %s167_s28 }
  0x20   : > { %p4693_p1 = scmp.ne.s32.totalorder %s167_s28, %s4692_s8  ;;  %p4701_p6 = scmp.lt.s32.totalorder %s4692_s8, %s4692_s8 }
  0x22   : > { %p4695_p13 = pnand %p4693_p1, %p4657_p12  ;;  %p4702_p5 = por %p4701_p6, %p4700_p2 }
  0x24   : > { %p4696_p0 = pneg %p4695_p13 }
  0x26   : > { %p4703_p10 = pnand %p4702_p5, %p4696_p0 }
  0x28   : > { %4706 = shalt.err (!%p4703_p10)
}
  0x29   : > { %s4809_s9 = smov 192   ;;  %s4810_s10 = smov 12  }
  0x2a   : > { %4123 = dma.hbm_to_vmem [thread:$0]  (!%p4895_p11), %s5341_s2, 9216, %s167_s28, [#allocation6], %s4809_s9, %s4809_s9, %s4810_s10  }
  0x2b   : > { %s4918_s13 = sadd.s32 1, %s4803_s18   ;;  %s28_s20 = sadd.s32 1, %s4799_s17 }
  0x2c   : > { %s25_s14 = ssub.s32 %s4803_s18, %s4918_s13  ;;  %p35_p2 = scmp.ne.s32.totalorder %s4799_s17, %s4795_s16 }
  0x2d   : > { %p26_p1 = scmp.eq.s32.totalorder %s25_s14, 0  ;;  %p36_p6 = scmp.eq.s32.totalorder %s4803_s18, 0 }
  0x2e   : > { %p5352_p3 = scmp.eq.s32.totalorder %s4867_s19, 1  ;;  %p4134_p9 = scmp.lt.s32.totalorder %s4803_s18, 2 }
  0x2f   : > { %s4927_s24 = scalar_select %p26_p1, %s4799_s17, %s28_s20  }
  0x30   : > { %p37_p12 = por %p36_p6, %p35_p2  ;;  %p4931_p7 = por %p5352_p3, %p35_p2 }
  0x31   : > { %s183_s26 = sand.u32 1, %s4799_s17   ;;  %s4102_s28 = smul.u32 768, %s4803_s18 }
  0x32   : > { %s5353_s25 = scalar_select %p4931_p7, 1, 0 }
  0x33   : > { %s4101_s27 = smul.u32 48, %s183_s26  ;;  %p4938_p11 = pnand %p4134_p9, %p37_p12 }
  0x34   : > { %s4945_s6 = scalar_lea.hbm %s5339_s0, %s4102_s28  ;;  %s4949_s9 = scalar_lea.sflag [#allocation3], %s183_s26 }
  0x35   : > { %s187_s7 = scalar_lea.vmem [#allocation2], %s4101_s27  ;;  %s4707_s10 = scalar_lea.hbm %s4945_s6, 768 }
  0x36   : > { %s194_s8 = sshll.u32 %s187_s7, 4  ;;  %p4708_p13 = scmp.ne.s32.totalorder %s4945_s6, %s4707_s10  ;;  %s4947_s8 = int_to_ptr.vmem [resolvable:$true] %s194_s8 }
  0x37   : > { %p4709_p0 = pneg %p4938_p11  ;;  %s4712_s14 = scalar_lea.hbm %s5339_s0, 1536 }
  0x38   : > { %p4713_p1 = scmp.lt.s32.totalorder %s4945_s6, %s5339_s0  ;;  %p4714_p2 = scmp.lt.s32.totalorder %s4712_s14, %s4707_s10 }
  0x39   : > { %p4710_p5 = pnand %p4709_p0, %p4708_p13 }
  0x3a   : > { %p4715_p6 = por %p4714_p2, %p4713_p1 }
  0x3b   : > { %p4711_p10 = pneg %p4710_p5 }
  0x3d   : > { %p4716_p12 = pnand %p4715_p6, %p4711_p10 }
  0x3f   : > { %4719 = shalt.err (!%p4716_p12)
}
  0x40   : > { %s4720_s26 = scalar_lea.vmem %s4947_s8, 768  ;;  %s4811_s27 = smov [#allocation2]  }
  0x41   : > { %p4721_p3 = scmp.ne.s32.totalorder %s4947_s8, %s4720_s26  ;;  %s4725_s30 = sshll.u32 %s4811_s27, 4  ;;  %s4726_s30 = int_to_ptr.vmem [resolvable:$false] %s4725_s30 }
  0x42   : > { %s4727_s5 = scalar_lea.vmem %s4726_s30, 1536  ;;  %p4728_p5 = scmp.lt.s32.totalorder %s4947_s8, %s4726_s30 }
  0x43   : > { %p4723_p9 = pnand %p4721_p3, %p4709_p0  ;;  %p4729_p7 = scmp.lt.s32.totalorder %s4727_s5, %s4720_s26 }
  0x45   : > { %p4724_p13 = pneg %p4723_p9  ;;  %p4730_p4 = por %p4729_p7, %p4728_p5 }
  0x47   : > { %p4731_p8 = pnand %p4730_p4, %p4724_p13 }
  0x49   : > { %4734 = shalt.err (!%p4731_p8)
}
  0x4a   : > { %s4812_s7 = smov 384   ;;  %s4813_s10 = smov 24  }
  0x4b   : > { %4127 = dma.hbm_to_vmem [thread:$0]  (!%p4938_p11), %s4945_s6, 768, %s4947_s8, %s4949_s9, %s4812_s7, %s4812_s7, %s4813_s10  }
  0x4c   : > { %p5355_p0 = scmp.ne.s32.totalorder %s5350_s23, 0 }
  0x4d   : > { %s4973_s11 = sand.u32 (!%p5355_p0), 1, %s4795_s16   ;;  %p5356_p4 = scmp.ne.s32.totalorder (!%p5355_p0), %s5348_s21, 0 }
  0x4e   : > { %206 = sbr.rel (%p5355_p0) target bundleno = 2052 (0x804), region = 36  ;;  %s209_s14 = scalar_lea.sflag (!%p5355_p0), [#allocation3], %s4973_s11 }
  0x4f   : > { %s4103_s12 = smul.u32 (!%p5355_p0), 48, %s4973_s11 }
  0x51   : > { %s4979_s20 = scalar_lea.vmem (!%p5355_p0), [#allocation2], %s4103_s12 }
  0x53   : > { %4778 = dma.done.wait (%p5356_p4), %s209_s14, 768  }
  0x54   : > { %4780 = vsyncadd (%p5356_p4), %s209_s14, 4294966528  ;;  %p5357_p8 = scmp.eq.s32.totalorder %s4867_s19, 0 }
  0x56   : > { %4782 = dma.done.wait (%p5357_p8), [#allocation6], 36864   ;;  %p5358_p7 = pmov %p5357_p8 }
  0x57   : > { %v4814_v0 = vmov 0   ;;  %v4199_v1 = vld [vmem:[#allocation5 + $0x1fc] ss:$36 sps:$4 sm:$0xff]   ;;  %v4205_v5 = vld [vmem:[#allocation5 + $0x1b4] ss:$36 sps:$4 sm:$0xff]   ;;  %vm4816_vm0 = vmmov 0  }
  0x58   : > { %4784 = vsyncadd (%p5358_p7), [#allocation6], 4294930432  ;;  %1674 = vmatprep.mubr.bf16.mxu1 %v4814_v0  ;;  %v4201_v2 = vld [vmem:[#allocation5 + $0x67c] ss:$36 sps:$4 sm:$0xff]   ;;  %1599 = vmatprep.subr.bf16.mxu0 %v4199_v1  ;;  %v4207_v6 = vld [vmem:[#allocation5 + $0x634] ss:$36 sps:$4 sm:$0xff]  }
  0x59   : > { %v4203_v3 = vld [vmem:[#allocation5 + $0x1f8] ss:$36 sps:$4 sm:$0xff]   ;;  %1642 = vmatprep.subr.bf16.mxu1 %v4201_v2  ;;  %v4209_v7 = vld [vmem:[#allocation5 + $0x1b0] ss:$36 sps:$4 sm:$0xff]   ;;  %v4215_v11 = vld [vmem:[#allocation5 + $0x168] ss:$36 sps:$4 sm:$0xff]  }
  0x5a   : > { %v4204_v4 = vld [vmem:[#allocation5 + $0x678] ss:$36 sps:$4 sm:$0xff]   ;;  %1600 = vmatpush1.bf16.msra.mxu0 %v4203_v3  ;;  %v4210_v8 = vld [vmem:[#allocation5 + $0x630] ss:$36 sps:$4 sm:$0xff]   ;;  %v4216_v12 = vld [vmem:[#allocation5 + $0x5e8] ss:$36 sps:$4 sm:$0xff]  }
  0x5b   : > { %1643 = vmatpush1.bf16.msra.mxu1 %v4204_v4  ;;  %1601 = vmatprep.subr.bf16.mxu0 %v4205_v5  ;;  %v4211_v9 = vld [vmem:[#allocation5 + $0x16c] ss:$36 sps:$4 sm:$0xff]   ;;  %v4217_v13 = vld [vmem:[#allocation5 + $0x124] ss:$36 sps:$4 sm:$0xff]   ;;  %v4223_v17 = vld [vmem:[#allocation5 + $0xdc] ss:$36 sps:$4 sm:$0xff]  }
  0x5c   : > { %1644 = vmatprep.subr.bf16.mxu1 %v4207_v6  ;;  %v4213_v10 = vld [vmem:[#allocation5 + $0x5ec] ss:$36 sps:$4 sm:$0xff]   ;;  %v4219_v14 = vld [vmem:[#allocation5 + $0x5a4] ss:$36 sps:$4 sm:$0xff]   ;;  %v4225_v18 = vld [vmem:[#allocation5 + $0x55c] ss:$36 sps:$4 sm:$0xff]  }
  0x5d   : > { %v4221_v15 = vld [vmem:[#allocation5 + $0x120] ss:$36 sps:$4 sm:$0xff]   ;;  %v4227_v19 = vld [vmem:[#allocation5 + $0xd8] ss:$36 sps:$4 sm:$0xff]   ;;  %v4233_v23 = vld [vmem:[#allocation5 + $0x90] ss:$36 sps:$4 sm:$0xff]  }
  0x5e   : > { %1602 = vmatpush1.bf16.msra.mxu0 %v4209_v7  ;;  %v4222_v16 = vld [vmem:[#allocation5 + $0x5a0] ss:$36 sps:$4 sm:$0xff]   ;;  %v4228_v20 = vld [vmem:[#allocation5 + $0x558] ss:$36 sps:$4 sm:$0xff]   ;;  %v4234_v24 = vld [vmem:[#allocation5 + $0x510] ss:$36 sps:$4 sm:$0xff]  }
  0x5f   : > { %1645 = vmatpush1.bf16.msra.mxu1 %v4210_v8  ;;  %1603 = vmatprep.subr.bf16.mxu0 %v4211_v9  ;;  %v4229_v21 = vld [vmem:[#allocation5 + $0x94] ss:$36 sps:$4 sm:$0xff]   ;;  %v4235_v25 = vld [vmem:[#allocation5 + $0x4c] ss:$36 sps:$4 sm:$0xff]   ;;  %v4241_v29 = vld [vmem:[#allocation5 + $0x4] ss:$36 sps:$4 sm:$0xff]  }
  0x60   : > { %1646 = vmatprep.subr.bf16.mxu1 %v4213_v10  ;;  %v4231_v22 = vld [vmem:[#allocation5 + $0x514] ss:$36 sps:$4 sm:$0xff]   ;;  %v4237_v26 = vld [vmem:[#allocation5 + $0x4cc] ss:$36 sps:$4 sm:$0xff]   ;;  %v4243_v30 = vld [vmem:[#allocation5 + $0x484] ss:$36 sps:$4 sm:$0xff]  }
  0x61   : > { %v4239_v27 = vld [vmem:[#allocation5 + $0x48] ss:$36 sps:$4 sm:$0xff]   ;;  %v4245_v31 = vld [vmem:[#allocation5] ss:$36 sps:$4 sm:$0xff]   ;;  %v4252_v39 = vld [vmem:[#allocation5 + $0x438] ss:$36 sps:$4 sm:$0xff]  }
  0x62   : > { %1604 = vmatpush1.bf16.msra.mxu0 %v4215_v11  ;;  %v4240_v28 = vld [vmem:[#allocation5 + $0x4c8] ss:$36 sps:$4 sm:$0xff]   ;;  %v4246_v32 = vld [vmem:[#allocation5 + $0x480] ss:$36 sps:$4 sm:$0xff]   ;;  %v4253_v40 = vld [vmem:[#allocation5 + $0x3f4] ss:$36 sps:$4 sm:$0xff]  }
  0x63   : > { %1647 = vmatpush1.bf16.msra.mxu1 %v4216_v12  ;;  %1605 = vmatprep.subr.bf16.mxu0 %v4217_v13  ;;  %v248_v33 = vld [vmem:[%s4979_s20 + $0x10] sm:$0xff]  ;;  %v251_v34 = vld [vmem:[%s4979_s20 + $0x28] sm:$0xff]  ;;  %v250_v51 = vld [vmem:[%s4979_s20 + $0x20] sm:$0xff]  ;;  %vm2035_vm1 = vcmask 523264   ;;  %vm2087_vm3 = vcmask 130048   ;;  %s4817_s21 = smov 64  }
  0x64   : > { %1648 = vmatprep.subr.bf16.mxu1 %v4219_v14  ;;  %v4247_v35 = vld [vmem:[#allocation5 + $0x43c] ss:$36 sps:$4 sm:$0xff]   ;;  %v4251_v36 = vld [vmem:[#allocation5 + $0x204] ss:$36 sps:$4 sm:$0xff]   ;;  %v4992_v37 = vpack.c.bf16 %v251_v34, %v248_v33  ;;  %v4258_v43 = vld [vmem:[#allocation5 + $0x3f0] ss:$36 sps:$4 sm:$0xff]  }
  0x65   : > { %v4249_v38 = vld [vmem:[#allocation5 + $0x200] ss:$36 sps:$4 sm:$0xff]   ;;  %v4255_v42 = vld [vmem:[#allocation5 + $0x1b8] ss:$36 sps:$4 sm:$0xff]   ;;  %v4259_v44 = vld [vmem:[#allocation5 + $0x3ac] ss:$36 sps:$4 sm:$0xff]  }
  0x66   : > { %1606 = vmatpush1.bf16.msra.mxu0 %v4221_v15  ;;  %v4257_v41 = vld [vmem:[#allocation5 + $0x1bc] ss:$36 sps:$4 sm:$0xff]   ;;  %v4263_v45 = vld [vmem:[#allocation5 + $0x174] ss:$36 sps:$4 sm:$0xff]   ;;  %v4264_v47 = vld [vmem:[#allocation5 + $0x3a8] ss:$36 sps:$4 sm:$0xff]  }
  0x67   : > { %1649 = vmatpush1.bf16.msra.mxu1 %v4222_v16  ;;  %1607 = vmatprep.subr.bf16.mxu0 %v4223_v17  ;;  %v4261_v46 = vld [vmem:[#allocation5 + $0x170] ss:$36 sps:$4 sm:$0xff]   ;;  %v4265_v48 = vld [vmem:[#allocation5 + $0x364] ss:$36 sps:$4 sm:$0xff]   ;;  %v4271_v55 = vld [vmem:[#allocation5 + $0x31c] ss:$36 sps:$4 sm:$0xff]  }
  0x68   : > { %1650 = vmatprep.subr.bf16.mxu1 %v4225_v18  ;;  %v4269_v49 = vld [vmem:[#allocation5 + $0x12c] ss:$36 sps:$4 sm:$0xff]   ;;  %v4270_v53 = vld [vmem:[#allocation5 + $0x360] ss:$36 sps:$4 sm:$0xff]   ;;  %v4276_v58 = vld [vmem:[#allocation5 + $0x318] ss:$36 sps:$4 sm:$0xff]  }
  0x69   : > { %v247_v50 = vld [vmem:[%s4979_s20 + $0x8] sm:$0xff]  ;;  %v4273_v57 = vld [vmem:[#allocation5 + $0xe0] ss:$36 sps:$4 sm:$0xff]   ;;  %v4282_v62 = vld [vmem:[#allocation5 + $0x2d0] ss:$36 sps:$4 sm:$0xff]   ;;  %s5280_s6 = scalar_lea.vmem [#allocation8], %s4103_s12 }
  0x6a   : > { %1608 = vmatpush1.bf16.msra.mxu0 %v4227_v19  ;;  %v4267_v52 = vld [vmem:[#allocation5 + $0x128] ss:$36 sps:$4 sm:$0xff]   ;;  %v4997_v54 = vpack.c.bf16 %v250_v51, %v247_v50  ;;  %v4277_v59 = vld [vmem:[#allocation5 + $0x2d4] ss:$36 sps:$4 sm:$0xff]   ;;  %v4281_v60 = vld [vmem:[#allocation5 + $0x9c] ss:$36 sps:$4 sm:$0xff]  }
  0x6b   : > { %1651 = vmatpush1.bf16.msra.mxu1 %v4228_v20  ;;  %1609 = vmatprep.subr.bf16.mxu0 %v4229_v21  ;;  %v4275_v56 = vld [vmem:[#allocation5 + $0xe4] ss:$36 sps:$4 sm:$0xff]   ;;  %v4279_v61 = vld [vmem:[#allocation5 + $0x98] ss:$36 sps:$4 sm:$0xff]   ;;  %v4283_v63 = vld [vmem:[#allocation5 + $0x28c] ss:$36 sps:$4 sm:$0xff]  }
  0x6c   : > { %1652 = vmatprep.subr.bf16.mxu1 %v4231_v22  ;;  %1631 = vmatprep.mubr.bf16.mxu0 %v4997_v54  ;;  %v4287_v1 = vld [vmem:[#allocation5 + $0x54] ss:$36 sps:$4 sm:$0xff]   ;;  %v4288_v3 = vld [vmem:[#allocation5 + $0x288] ss:$36 sps:$4 sm:$0xff]   ;;  %v4294_v7 = vld [vmem:[#allocation5 + $0x240] ss:$36 sps:$4 sm:$0xff]  }
  0x6d   : > { %v4285_v2 = vld [vmem:[#allocation5 + $0x50] ss:$36 sps:$4 sm:$0xff]   ;;  %v4289_v4 = vld [vmem:[#allocation5 + $0x244] ss:$36 sps:$4 sm:$0xff]   ;;  %v4303_v15 = vld [vmem:[#allocation5 + $0x3fc] ss:$36 sps:$4 sm:$0xff]  }
  0x6e   : > { %1610 = vmatpush1.bf16.msra.mxu0 %v4233_v23  ;;  %v4293_v5 = vld [vmem:[#allocation5 + $0xc] ss:$36 sps:$4 sm:$0xff]   ;;  %v4297_v10 = vld [vmem:[#allocation5 + $0x444] ss:$36 sps:$4 sm:$0xff]   ;;  %v4306_v16 = vld [vmem:[#allocation5 + $0x63c] ss:$36 sps:$4 sm:$0xff]  }
  0x6f   : > { %1653 = vmatpush1.bf16.msra.mxu1 %v4234_v24  ;;  %1611 = vmatprep.subr.bf16.mxu0 %v4235_v25  ;;  %v4291_v6 = vld [vmem:[#allocation5 + $0x8] ss:$36 sps:$4 sm:$0xff]   ;;  %v246_v8 = vld [vmem:[%s4979_s20] sm:$0xff]  ;;  %v4301_v17 = vld [vmem:[#allocation5 + $0x3f8] ss:$36 sps:$4 sm:$0xff]   ;;  %s3499_s8 = sshll.u32 %s5280_s6, 4  ;;  %s5289_s8 = int_to_ptr.vmem [resolvable:$true] %s3499_s8 }
  0x70   : > { %1654 = vmatprep.subr.bf16.mxu1 %v4237_v26  ;;  %v249_v9 = vld [vmem:[%s4979_s20 + $0x18] sm:$0xff]  ;;  %v4295_v13 = vld [vmem:[#allocation5 + $0x440] ss:$36 sps:$4 sm:$0xff]   ;;  %v4307_v21 = vld [vmem:[#allocation5 + $0x3b0] ss:$36 sps:$4 sm:$0xff]   ;;  %s4104_s9 = smul.u32 768, %s4867_s19 }
  0x71   : > { %v4300_v11 = vld [vmem:[#allocation5 + $0x684] ss:$36 sps:$4 sm:$0xff]   ;;  %v5003_v12 = vpack.c.bf16 %v249_v9, %v246_v8  ;;  %v4304_v18 = vld [vmem:[#allocation5 + $0x638] ss:$36 sps:$4 sm:$0xff]   ;;  %v4310_v22 = vld [vmem:[#allocation5 + $0x5f0] ss:$36 sps:$4 sm:$0xff]  }
  0x72   : > { %1612 = vmatpush1.bf16.msra.mxu0 %v4239_v27  ;;  %v4298_v14 = vld [vmem:[#allocation5 + $0x680] ss:$36 sps:$4 sm:$0xff]   ;;  %v4309_v19 = vld [vmem:[#allocation5 + $0x3b4] ss:$36 sps:$4 sm:$0xff]   ;;  %v4315_v23 = vld [vmem:[#allocation5 + $0x36c] ss:$36 sps:$4 sm:$0xff]   ;;  %s5295_s27 = scalar_lea.hbm %s5343_s4, %s4104_s9 }
  0x73   : > { %1655 = vmatpush1.bf16.msra.mxu1 %v4240_v28  ;;  %1613 = vmatprep.subr.bf16.mxu0 %v4241_v29  ;;  %v4312_v20 = vld [vmem:[#allocation5 + $0x5f4] ss:$36 sps:$4 sm:$0xff]   ;;  %v4318_v24 = vld [vmem:[#allocation5 + $0x5ac] ss:$36 sps:$4 sm:$0xff]   ;;  %v4321_v27 = vld [vmem:[#allocation5 + $0x324] ss:$36 sps:$4 sm:$0xff]  }
  0x74   : > { %1656 = vmatprep.subr.bf16.mxu1 %v4243_v30  ;;  %v4313_v25 = vld [vmem:[#allocation5 + $0x368] ss:$36 sps:$4 sm:$0xff]   ;;  %v4319_v29 = vld [vmem:[#allocation5 + $0x320] ss:$36 sps:$4 sm:$0xff]   ;;  %v4325_v33 = vld [vmem:[#allocation5 + $0x2d8] ss:$36 sps:$4 sm:$0xff]  }
  0x75   : > { %v4316_v26 = vld [vmem:[#allocation5 + $0x5a8] ss:$36 sps:$4 sm:$0xff]   ;;  %v4322_v30 = vld [vmem:[#allocation5 + $0x560] ss:$36 sps:$4 sm:$0xff]   ;;  %v4328_v34 = vld [vmem:[#allocation5 + $0x518] ss:$36 sps:$4 sm:$0xff]  }
  0x76   : > { %1614 = vmatpush1.bf16.msra.mxu0 %v4245_v31  ;;  %v4324_v28 = vld [vmem:[#allocation5 + $0x564] ss:$36 sps:$4 sm:$0xff]   ;;  %v4327_v31 = vld [vmem:[#allocation5 + $0x2dc] ss:$36 sps:$4 sm:$0xff]   ;;  %s3486_s30 = scalar_lea.sflag [#allocation4], %s4973_s11  ;;  %s4735_s19 = scalar_lea.vmem %s5289_s8, 768 }
  0x77   : > { %1657 = vmatpush1.bf16.msra.mxu1 %v4246_v32  ;;  %1615 = vmatprep.subr.bf16.mxu0 %v4247_v35  ;;  %v4330_v32 = vld [vmem:[#allocation5 + $0x51c] ss:$36 sps:$4 sm:$0xff]   ;;  %v4333_v35 = vld [vmem:[#allocation5 + $0x294] ss:$36 sps:$4 sm:$0xff]   ;;  %p4736_p11 = scmp.ne.s32.totalorder %s5289_s8, %s4735_s19  ;;  %p5363_p10 = scmp.ne.s32.totalorder %s5353_s25, 0 }
  0x78   : > { %1685 = vmatprep.subr.bf16.mxu1 %v4251_v36  ;;  %v4336_v36 = vld [vmem:[#allocation5 + $0x4d4] ss:$36 sps:$4 sm:$0xff]   ;;  %v4346_v50 = vld [vmem:[#allocation5 + $0x1c0] ss:$36 sps:$4 sm:$0xff]   ;;  %s4818_s5 = smov [#allocation8]  }
  0x79   : > { %v4376_v51 = vld [vmem:[#allocation5 + $0x640] ss:$36 sps:$4 sm:$0xff]   ;;  %v4361_v8 = vld [vmem:[#allocation5 + $0x58] ss:$36 sps:$4 sm:$0xff]   ;;  %p4737_p1 = pnand %p4736_p11, %p5363_p10  ;;  %s4739_s7 = sshll.u32 %s4818_s5, 4  ;;  %s4740_s7 = int_to_ptr.vmem [resolvable:$false] %s4739_s7 }
  0x7a   : > { %1675 = vmatmul.mubr.bf16.vlgmr.msra.gmra.mxu1 %v4992_v37  ;;  %1616 = vmatpush2.bf16.msra.mxu0 %v4252_v39  ;;  %v4334_v39 = vld [vmem:[#allocation5 + $0x4d0] ss:$36 sps:$4 sm:$0xff]   ;;  %v4406_v9 = vld [vmem:[#allocation5 + $0x4d8] ss:$36 sps:$4 sm:$0xff]   ;;  %s4741_s10 = scalar_lea.vmem %s4740_s7, 1536  ;;  %p4742_p6 = scmp.lt.s32.totalorder %s5289_s8, %s4740_s7 }
  0x7b   : > { %1686 = vmatpush1.bf16.msra.mxu1 %v4249_v38  ;;  %1617 = vmatprep.subr.bf16.mxu0 %v4253_v40  ;;  %v4331_v38 = vld [vmem:[#allocation5 + $0x290] ss:$36 sps:$4 sm:$0xff]   ;;  %p4738_p2 = pneg %p4737_p1  ;;  %p4743_p12 = scmp.lt.s32.totalorder %s4741_s10, %s4735_s19 }
  0x7c   : > { %1687 = vmatprep.subr.bf16.mxu1 %v4257_v41  ;;  %1717 = vmatprep.mubr.bf16.mxu1 %v4997_v54  ;;  %v4339_v40 = vld [vmem:[#allocation5 + $0x24c] ss:$36 sps:$4 sm:$0xff]  }
  0x7d   : > { %v4342_v41 = vld [vmem:[#allocation5 + $0x48c] ss:$36 sps:$4 sm:$0xff]   ;;  %p4744_p3 = por %p4743_p12, %p4742_p6 }
  0x7e   : > { %1618 = vmatpush2.bf16.msra.mxu0 %v4258_v43  ;;  %v4340_v43 = vld [vmem:[#allocation5 + $0x488] ss:$36 sps:$4 sm:$0xff]  }
  0x7f   : > { %1688 = vmatpush1.bf16.msra.mxu1 %v4255_v42  ;;  %1619 = vmatprep.subr.bf16.mxu0 %v4259_v44  ;;  %v4337_v42 = vld [vmem:[#allocation5 + $0x248] ss:$36 sps:$4 sm:$0xff]   ;;  %p4745_p9 = pnand %p4744_p3, %p4738_p2 }
  0x80   : > { %1689 = vmatprep.subr.bf16.mxu1 %v4263_v45  ;;  %v4345_v44 = vld [vmem:[#allocation5 + $0x20c] ss:$36 sps:$4 sm:$0xff]  }
  0x81   : > { %v4372_v45 = vld [vmem:[#allocation5 + $0x68c] ss:$36 sps:$4 sm:$0xff]  }
  0x82   : > { %1620 = vmatpush2.bf16.msra.mxu0 %v4264_v47  ;;  %v4370_v47 = vld [vmem:[#allocation5 + $0x688] ss:$36 sps:$4 sm:$0xff]  }
  0x83   : > { %1690 = vmatpush1.bf16.msra.mxu1 %v4261_v46  ;;  %1621 = vmatprep.subr.bf16.mxu0 %v4265_v48  ;;  %v4343_v46 = vld [vmem:[#allocation5 + $0x208] ss:$36 sps:$4 sm:$0xff]  }
  0x84   : > { %1691 = vmatprep.subr.bf16.mxu1 %v4269_v49  ;;  %v4348_v48 = vld [vmem:[#allocation5 + $0x1c4] ss:$36 sps:$4 sm:$0xff]  }
  0x85   : > { %v4378_v49 = vld [vmem:[#allocation5 + $0x644] ss:$36 sps:$4 sm:$0xff]  }
  0x86   : > { %1622 = vmatpush2.bf16.msra.mxu0 %v4270_v53  ;;  %v4384_v53 = vld [vmem:[#allocation5 + $0x5fc] ss:$36 sps:$4 sm:$0xff]  }
  0x87   : > { %1692 = vmatpush1.bf16.msra.mxu1 %v4267_v52  ;;  %1623 = vmatprep.subr.bf16.mxu0 %v4271_v55  ;;  %v4351_v52 = vld [vmem:[#allocation5 + $0x17c] ss:$36 sps:$4 sm:$0xff]  }
  0x88   : > { %1693 = vmatprep.subr.bf16.mxu1 %v4275_v56  ;;  %v4349_v55 = vld [vmem:[#allocation5 + $0x178] ss:$36 sps:$4 sm:$0xff]  }
  0x89   : > { %v4382_v56 = vld [vmem:[#allocation5 + $0x5f8] ss:$36 sps:$4 sm:$0xff]  }
  0x8a   : > { %1624 = vmatpush2.bf16.msra.mxu0 %v4276_v58  ;;  %v4390_v58 = vld [vmem:[#allocation5 + $0x5b4] ss:$36 sps:$4 sm:$0xff]  }
  0x8b   : > { %1694 = vmatpush1.bf16.msra.mxu1 %v4273_v57  ;;  %1625 = vmatprep.subr.bf16.mxu0 %v4277_v59  ;;  %v4354_v57 = vld [vmem:[#allocation5 + $0x134] ss:$36 sps:$4 sm:$0xff]  }
  0x8c   : > { %1695 = vmatprep.subr.bf16.mxu1 %v4281_v60  ;;  %v4352_v59 = vld [vmem:[#allocation5 + $0x130] ss:$36 sps:$4 sm:$0xff]  }
  0x8d   : > { %v4388_v60 = vld [vmem:[#allocation5 + $0x5b0] ss:$36 sps:$4 sm:$0xff]  }
  0x8e   : > { %1626 = vmatpush2.bf16.msra.mxu0 %v4282_v62  ;;  %v4396_v62 = vld [vmem:[#allocation5 + $0x56c] ss:$36 sps:$4 sm:$0xff]  }
  0x8f   : > { %1696 = vmatpush1.bf16.msra.mxu1 %v4279_v61  ;;  %1627 = vmatprep.subr.bf16.mxu0 %v4283_v63  ;;  %v4357_v61 = vld [vmem:[#allocation5 + $0xec] ss:$36 sps:$4 sm:$0xff]  }
  0x90   : > { %1697 = vmatprep.subr.bf16.mxu1 %v4287_v1  ;;  %v4355_v63 = vld [vmem:[#allocation5 + $0xe8] ss:$36 sps:$4 sm:$0xff]  }
  0x91   : > { %v4394_v1 = vld [vmem:[#allocation5 + $0x568] ss:$36 sps:$4 sm:$0xff]  }
  0x92   : > { %1628 = vmatpush2.bf16.msra.mxu0 %v4288_v3  ;;  %v4402_v3 = vld [vmem:[#allocation5 + $0x524] ss:$36 sps:$4 sm:$0xff]  }
  0x93   : > { %1698 = vmatpush1.bf16.msra.mxu1 %v4285_v2  ;;  %1629 = vmatprep.subr.bf16.mxu0 %v4289_v4  ;;  %v4360_v2 = vld [vmem:[#allocation5 + $0xa4] ss:$36 sps:$4 sm:$0xff]  }
  0x94   : > { %1699 = vmatprep.subr.bf16.mxu1 %v4293_v5  ;;  %v4358_v4 = vld [vmem:[#allocation5 + $0xa0] ss:$36 sps:$4 sm:$0xff]  }
  0x95   : > { %v4400_v5 = vld [vmem:[#allocation5 + $0x520] ss:$36 sps:$4 sm:$0xff]  }
  0x96   : > { %1630 = vmatpush2.bf16.msra.mxu0 %v4294_v7  ;;  %v4408_v7 = vld [vmem:[#allocation5 + $0x4dc] ss:$36 sps:$4 sm:$0xff]  }
  0x97   : > { %1700 = vmatpush1.bf16.msra.mxu1 %v4291_v6  ;;  %1728 = vmatprep.subr.bf16.mxu0 %v4300_v11  ;;  %v4363_v6 = vld [vmem:[#allocation5 + $0x5c] ss:$36 sps:$4 sm:$0xff]   ;;  %v4414_v11 = vld [vmem:[#allocation5 + $0x494] ss:$36 sps:$4 sm:$0xff]  }
  0x98   : > { %1701 = vmatprep.subr.bf16.mxu1 %v4297_v10  ;;  %v4366_v10 = vld [vmem:[#allocation5 + $0x14] ss:$36 sps:$4 sm:$0xff]  }
  0x99   : > { %1632 = vmatmul.mubr.bf16.vlgmr.msra.gmra.mxu0 %v5003_v12 }
  0x9a   : > { %1729 = vmatpush1.bf16.msra.mxu0 %v4298_v14  ;;  %1760 = vmatprep.mubr.bf16.mxu0 %v4814_v0  ;;  %v4412_v14 = vld [vmem:[#allocation5 + $0x490] ss:$36 sps:$4 sm:$0xff]  }
  0x9b   : > { %1702 = vmatpush2.bf16.msra.mxu1 %v4295_v13  ;;  %1730 = vmatprep.subr.bf16.mxu0 %v4306_v16  ;;  %v4364_v13 = vld [vmem:[#allocation5 + $0x10] ss:$36 sps:$4 sm:$0xff]  }
  0x9c   : > { %1703 = vmatprep.subr.bf16.mxu1 %v4303_v15  ;;  %v4369_v15 = vld [vmem:[#allocation5 + $0x44c] ss:$36 sps:$4 sm:$0xff]   ;;  %v4417_v16 = vld [vmem:[#allocation5 + $0x214] ss:$36 sps:$4 sm:$0xff]  }
  0x9e   : > { %1731 = vmatpush1.bf16.msra.mxu0 %v4304_v18  ;;  %v4375_v18 = vld [vmem:[#allocation5 + $0x404] ss:$36 sps:$4 sm:$0xff]  }
  0x9f   : > { %1704 = vmatpush2.bf16.msra.mxu1 %v4301_v17  ;;  %1732 = vmatprep.subr.bf16.mxu0 %v4312_v20  ;;  %v4367_v17 = vld [vmem:[#allocation5 + $0x448] ss:$36 sps:$4 sm:$0xff]  }
  0xa0   : > { %1705 = vmatprep.subr.bf16.mxu1 %v4309_v19  ;;  %v4415_v19 = vld [vmem:[#allocation5 + $0x210] ss:$36 sps:$4 sm:$0xff]  }
  0xa1   : > { %v4420_v20 = vld [vmem:[#allocation5 + $0x1cc] ss:$36 sps:$4 sm:$0xff]  }
  0xa2   : > { %1733 = vmatpush1.bf16.msra.mxu0 %v4310_v22  ;;  %v4381_v22 = vld [vmem:[#allocation5 + $0x3bc] ss:$36 sps:$4 sm:$0xff]  }
  0xa3   : > { %1706 = vmatpush2.bf16.msra.mxu1 %v4307_v21  ;;  %1734 = vmatprep.subr.bf16.mxu0 %v4318_v24  ;;  %v4373_v21 = vld [vmem:[#allocation5 + $0x400] ss:$36 sps:$4 sm:$0xff]  }
  0xa4   : > { %1707 = vmatprep.subr.bf16.mxu1 %v4315_v23  ;;  %v4418_v23 = vld [vmem:[#allocation5 + $0x1c8] ss:$36 sps:$4 sm:$0xff]  }
  0xa5   : > { %v4423_v24 = vld [vmem:[#allocation5 + $0x184] ss:$36 sps:$4 sm:$0xff]  }
  0xa6   : > { %1735 = vmatpush1.bf16.msra.mxu0 %v4316_v26  ;;  %v4387_v26 = vld [vmem:[#allocation5 + $0x374] ss:$36 sps:$4 sm:$0xff]  }
  0xa7   : > { %1708 = vmatpush2.bf16.msra.mxu1 %v4313_v25  ;;  %1736 = vmatprep.subr.bf16.mxu0 %v4324_v28  ;;  %v4379_v25 = vld [vmem:[#allocation5 + $0x3b8] ss:$36 sps:$4 sm:$0xff]  }
  0xa8   : > { %1709 = vmatprep.subr.bf16.mxu1 %v4321_v27  ;;  %v4421_v27 = vld [vmem:[#allocation5 + $0x180] ss:$36 sps:$4 sm:$0xff]  }
  0xa9   : > { %v4426_v28 = vld [vmem:[#allocation5 + $0x13c] ss:$36 sps:$4 sm:$0xff]  }
  0xaa   : > { %1737 = vmatpush1.bf16.msra.mxu0 %v4322_v30  ;;  %v4424_v30 = vld [vmem:[#allocation5 + $0x138] ss:$36 sps:$4 sm:$0xff]  }
  0xab   : > { %1710 = vmatpush2.bf16.msra.mxu1 %v4319_v29  ;;  %1738 = vmatprep.subr.bf16.mxu0 %v4330_v32  ;;  %v4385_v29 = vld [vmem:[#allocation5 + $0x370] ss:$36 sps:$4 sm:$0xff]  }
  0xac   : > { %1711 = vmatprep.subr.bf16.mxu1 %v4327_v31  ;;  %v4393_v31 = vld [vmem:[#allocation5 + $0x32c] ss:$36 sps:$4 sm:$0xff]   ;;  %v4429_v32 = vld [vmem:[#allocation5 + $0xf4] ss:$36 sps:$4 sm:$0xff]  }
  0xae   : > { %1739 = vmatpush1.bf16.msra.mxu0 %v4328_v34  ;;  %v4399_v34 = vld [vmem:[#allocation5 + $0x2e4] ss:$36 sps:$4 sm:$0xff]  }
  0xaf   : > { %1712 = vmatpush2.bf16.msra.mxu1 %v4325_v33  ;;  %1740 = vmatprep.subr.bf16.mxu0 %v4336_v36  ;;  %v4391_v33 = vld [vmem:[#allocation5 + $0x328] ss:$36 sps:$4 sm:$0xff]  }
  0xb0   : > { %1713 = vmatprep.subr.bf16.mxu1 %v4333_v35  ;;  %v4427_v35 = vld [vmem:[#allocation5 + $0xf0] ss:$36 sps:$4 sm:$0xff]  }
  0xb1   : > { %v4432_v36 = vld [vmem:[#allocation5 + $0xac] ss:$36 sps:$4 sm:$0xff]  }
  0xb2   : > { %1741 = vmatpush1.bf16.msra.mxu0 %v4334_v39  ;;  %v4405_v39 = vld [vmem:[#allocation5 + $0x29c] ss:$36 sps:$4 sm:$0xff]  }
  0xb3   : > { %1714 = vmatpush2.bf16.msra.mxu1 %v4331_v38  ;;  %1742 = vmatprep.subr.bf16.mxu0 %v4342_v41  ;;  %v4397_v38 = vld [vmem:[#allocation5 + $0x2e0] ss:$36 sps:$4 sm:$0xff]  }
  0xb4   : > { %1715 = vmatprep.subr.bf16.mxu1 %v4339_v40  ;;  %v4430_v40 = vld [vmem:[#allocation5 + $0xa8] ss:$36 sps:$4 sm:$0xff]  }
  0xb5   : > { %v4435_v41 = vld [vmem:[#allocation5 + $0x64] ss:$36 sps:$4 sm:$0xff]  }
  0xb6   : > { %1743 = vmatpush1.bf16.msra.mxu0 %v4340_v43  ;;  %v4433_v43 = vld [vmem:[#allocation5 + $0x60] ss:$36 sps:$4 sm:$0xff]  }
  0xb7   : > { %1716 = vmatpush2.bf16.msra.mxu1 %v4337_v42  ;;  %1771 = vmatprep.subr.bf16.mxu0 %v4345_v44  ;;  %v4403_v42 = vld [vmem:[#allocation5 + $0x298] ss:$36 sps:$4 sm:$0xff]  }
  0xb8   : > { %1814 = vmatprep.subr.bf16.mxu1 %v4372_v45  ;;  %v4411_v44 = vld [vmem:[#allocation5 + $0x254] ss:$36 sps:$4 sm:$0xff]   ;;  %v4438_v45 = vld [vmem:[#allocation5 + $0x1c] ss:$36 sps:$4 sm:$0xff]  }
  0xb9   : > { %1761 = vmatmul.mubr.bf16.vlgmr.msra.gmra.mxu0 %v4992_v37 }
  0xba   : > { %1718 = vmatmul.mubr.bf16.vlgmr.msra.gmra.mxu1 %v5003_v12  ;;  %1772 = vmatpush1.bf16.msra.mxu0 %v4343_v46  ;;  %v4409_v46 = vld [vmem:[#allocation5 + $0x250] ss:$36 sps:$4 sm:$0xff]  }
  0xbb   : > { %1815 = vmatpush1.bf16.msra.mxu1 %v4370_v47  ;;  %1773 = vmatprep.subr.bf16.mxu0 %v4348_v48  ;;  %v4436_v47 = vld [vmem:[#allocation5 + $0x18] ss:$36 sps:$4 sm:$0xff]  }
  0xbc   : > { %1816 = vmatprep.subr.bf16.mxu1 %v4378_v49  ;;  %1803 = vmatprep.mubr.bf16.mxu0 %v4997_v54  ;;  %v4441_v48 = vld [vmem:[#allocation5 + $0x694] ss:$36 sps:$4 sm:$0xff]  }
  0xbd   : > { %1846 = vmatprep.mubr.bf16.mxu1 %v4814_v0  ;;  %v4444_v49 = vld [vmem:[#allocation5 + $0x454] ss:$36 sps:$4 sm:$0xff]  }
  0xbe   : > { %1774 = vmatpush1.bf16.msra.mxu0 %v4346_v50  ;;  %v4439_v50 = vld [vmem:[#allocation5 + $0x690] ss:$36 sps:$4 sm:$0xff]  }
  0xbf   : > { %1817 = vmatpush1.bf16.msra.mxu1 %v4376_v51  ;;  %1775 = vmatprep.subr.bf16.mxu0 %v4351_v52  ;;  %v4442_v51 = vld [vmem:[#allocation5 + $0x450] ss:$36 sps:$4 sm:$0xff]  }
  0xc0   : > { %1818 = vmatprep.subr.bf16.mxu1 %v4384_v53  ;;  %v4447_v52 = vld [vmem:[#allocation5 + $0x64c] ss:$36 sps:$4 sm:$0xff]  }
  0xc1   : > { %v4450_v53 = vld [vmem:[#allocation5 + $0x40c] ss:$36 sps:$4 sm:$0xff]  }
  0xc2   : > { %1776 = vmatpush1.bf16.msra.mxu0 %v4349_v55  ;;  %v4445_v55 = vld [vmem:[#allocation5 + $0x648] ss:$36 sps:$4 sm:$0xff]  }
  0xc3   : > { %1819 = vmatpush1.bf16.msra.mxu1 %v4382_v56  ;;  %1777 = vmatprep.subr.bf16.mxu0 %v4354_v57  ;;  %v4448_v56 = vld [vmem:[#allocation5 + $0x408] ss:$36 sps:$4 sm:$0xff]  }
  0xc4   : > { %1820 = vmatprep.subr.bf16.mxu1 %v4390_v58  ;;  %v4453_v57 = vld [vmem:[#allocation5 + $0x604] ss:$36 sps:$4 sm:$0xff]  }
  0xc5   : > { %v4456_v58 = vld [vmem:[#allocation5 + $0x3c4] ss:$36 sps:$4 sm:$0xff]  }
  0xc6   : > { %1778 = vmatpush1.bf16.msra.mxu0 %v4352_v59  ;;  %v4451_v59 = vld [vmem:[#allocation5 + $0x600] ss:$36 sps:$4 sm:$0xff]  }
  0xc7   : > { %1821 = vmatpush1.bf16.msra.mxu1 %v4388_v60  ;;  %1779 = vmatprep.subr.bf16.mxu0 %v4357_v61  ;;  %v4454_v60 = vld [vmem:[#allocation5 + $0x3c0] ss:$36 sps:$4 sm:$0xff]  }
  0xc8   : > { %1822 = vmatprep.subr.bf16.mxu1 %v4396_v62  ;;  %v4459_v61 = vld [vmem:[#allocation5 + $0x5bc] ss:$36 sps:$4 sm:$0xff]  }
  0xc9   : > { %v4462_v62 = vld [vmem:[#allocation5 + $0x37c] ss:$36 sps:$4 sm:$0xff]  }
  0xca   : > { %1780 = vmatpush1.bf16.msra.mxu0 %v4355_v63  ;;  %v4457_v63 = vld [vmem:[#allocation5 + $0x5b8] ss:$36 sps:$4 sm:$0xff]  }
  0xcb   : > { %1823 = vmatpush1.bf16.msra.mxu1 %v4394_v1  ;;  %1781 = vmatprep.subr.bf16.mxu0 %v4360_v2  ;;  %v4460_v1 = vld [vmem:[#allocation5 + $0x378] ss:$36 sps:$4 sm:$0xff]  }
  0xcc   : > { %1824 = vmatprep.subr.bf16.mxu1 %v4402_v3  ;;  %v4465_v2 = vld [vmem:[#allocation5 + $0x574] ss:$36 sps:$4 sm:$0xff]  }
  0xcd   : > { %v4468_v3 = vld [vmem:[#allocation5 + $0x334] ss:$36 sps:$4 sm:$0xff]  }
  0xce   : > { %1782 = vmatpush1.bf16.msra.mxu0 %v4358_v4  ;;  %v4463_v4 = vld [vmem:[#allocation5 + $0x570] ss:$36 sps:$4 sm:$0xff]  }
  0xcf   : > { %1825 = vmatpush1.bf16.msra.mxu1 %v4400_v5  ;;  %1783 = vmatprep.subr.bf16.mxu0 %v4363_v6  ;;  %v4466_v5 = vld [vmem:[#allocation5 + $0x330] ss:$36 sps:$4 sm:$0xff]  }
  0xd0   : > { %1826 = vmatprep.subr.bf16.mxu1 %v4408_v7  ;;  %v4471_v6 = vld [vmem:[#allocation5 + $0x52c] ss:$36 sps:$4 sm:$0xff]  }
  0xd1   : > { %v4474_v7 = vld [vmem:[#allocation5 + $0x2ec] ss:$36 sps:$4 sm:$0xff]  }
  0xd2   : > { %1784 = vmatpush1.bf16.msra.mxu0 %v4361_v8  ;;  %v4469_v8 = vld [vmem:[#allocation5 + $0x528] ss:$36 sps:$4 sm:$0xff]  }
  0xd3   : > { %1827 = vmatpush1.bf16.msra.mxu1 %v4406_v9  ;;  %1785 = vmatprep.subr.bf16.mxu0 %v4366_v10  ;;  %v4472_v9 = vld [vmem:[#allocation5 + $0x2e8] ss:$36 sps:$4 sm:$0xff]  }
  0xd4   : > { %1828 = vmatprep.subr.bf16.mxu1 %v4414_v11  ;;  %v4477_v10 = vld [vmem:[#allocation5 + $0x4e4] ss:$36 sps:$4 sm:$0xff]  }
  0xd5   : > { %v4480_v11 = vld [vmem:[#allocation5 + $0x2a4] ss:$36 sps:$4 sm:$0xff]  }
  0xd6   : > { %1786 = vmatpush1.bf16.msra.mxu0 %v4364_v13  ;;  %v4475_v13 = vld [vmem:[#allocation5 + $0x4e0] ss:$36 sps:$4 sm:$0xff]  }
  0xd7   : > { %1829 = vmatpush1.bf16.msra.mxu1 %v4412_v14  ;;  %1787 = vmatprep.subr.bf16.mxu0 %v4369_v15  ;;  %v4478_v14 = vld [vmem:[#allocation5 + $0x2a0] ss:$36 sps:$4 sm:$0xff]  }
  0xd8   : > { %1857 = vmatprep.subr.bf16.mxu1 %v4417_v16  ;;  %v4483_v15 = vld [vmem:[#allocation5 + $0x49c] ss:$36 sps:$4 sm:$0xff]  }
  0xd9   : > { %v4486_v16 = vld [vmem:[#allocation5 + $0x25c] ss:$36 sps:$4 sm:$0xff]  }
  0xda   : > { %1847 = vmatmul.mubr.bf16.vlgmr.msra.gmra.mxu1 %v4992_v37  ;;  %1788 = vmatpush2.bf16.msra.mxu0 %v4367_v17  ;;  %v4481_v17 = vld [vmem:[#allocation5 + $0x498] ss:$36 sps:$4 sm:$0xff]  }
  0xdb   : > { %1858 = vmatpush1.bf16.msra.mxu1 %v4415_v19  ;;  %1789 = vmatprep.subr.bf16.mxu0 %v4375_v18  ;;  %v4484_v18 = vld [vmem:[#allocation5 + $0x258] ss:$36 sps:$4 sm:$0xff]  }
  0xdc   : > { %1859 = vmatprep.subr.bf16.mxu1 %v4420_v20  ;;  %1889 = vmatprep.mubr.bf16.mxu1 %v4997_v54  ;;  %v4487_v19 = vld [vmem:[#allocation5 + $0x458] ss:$36 sps:$4 sm:$0xff]  }
  0xdd   : > { %v4488_v20 = vld [vmem:[#allocation5 + $0x218] ss:$36 sps:$4 sm:$0xff]  }
  0xde   : > { %1790 = vmatpush2.bf16.msra.mxu0 %v4373_v21  ;;  %v4489_v21 = vld [vmem:[#allocation5 + $0x698] ss:$36 sps:$4 sm:$0xff]  }
  0xdf   : > { %1860 = vmatpush1.bf16.msra.mxu1 %v4418_v23  ;;  %1791 = vmatprep.subr.bf16.mxu0 %v4381_v22  ;;  %v4815_v22 = vmov 0.0   ;;  %v4490_v23 = vld [vmem:[#allocation5 + $0x410] ss:$36 sps:$4 sm:$0xff]  }
  0xe0   : > { %1861 = vmatprep.subr.bf16.mxu1 %v4423_v24  ;;  %v4491_v24 = vld [vmem:[#allocation5 + $0x1d0] ss:$36 sps:$4 sm:$0xff]  }
  0xe2   : > { %1792 = vmatpush2.bf16.msra.mxu0 %v4379_v25  ;;  %v4492_v25 = vld [vmem:[#allocation5 + $0x650] ss:$36 sps:$4 sm:$0xff]  }
  0xe3   : > { %1862 = vmatpush1.bf16.msra.mxu1 %v4421_v27  ;;  %1793 = vmatprep.subr.bf16.mxu0 %v4387_v26  ;;  %v4493_v26 = vld [vmem:[#allocation5 + $0x3c8] ss:$36 sps:$4 sm:$0xff]  }
  0xe4   : > { %1863 = vmatprep.subr.bf16.mxu1 %v4426_v28  ;;  %v4494_v27 = vld [vmem:[#allocation5 + $0x188] ss:$36 sps:$4 sm:$0xff]  }
  0xe5   : > { %v4495_v28 = vld [vmem:[#allocation5 + $0x608] ss:$36 sps:$4 sm:$0xff]  }
  0xe6   : > { %1794 = vmatpush2.bf16.msra.mxu0 %v4385_v29  ;;  %v4496_v29 = vld [vmem:[#allocation5 + $0x380] ss:$36 sps:$4 sm:$0xff]  }
  0xe7   : > { %1864 = vmatpush1.bf16.msra.mxu1 %v4424_v30  ;;  %1795 = vmatprep.subr.bf16.mxu0 %v4393_v31  ;;  %v4497_v30 = vld [vmem:[#allocation5 + $0x140] ss:$36 sps:$4 sm:$0xff]  }
  0xe8   : > { %1865 = vmatprep.subr.bf16.mxu1 %v4429_v32  ;;  %v4498_v31 = vld [vmem:[#allocation5 + $0x5c0] ss:$36 sps:$4 sm:$0xff]   ;;  %v4500_v32 = vld [vmem:[#allocation5 + $0xf8] ss:$36 sps:$4 sm:$0xff]  }
  0xea   : > { %1796 = vmatpush2.bf16.msra.mxu0 %v4391_v33  ;;  %v4501_v33 = vld [vmem:[#allocation5 + $0x578] ss:$36 sps:$4 sm:$0xff]  }
  0xeb   : > { %1866 = vmatpush1.bf16.msra.mxu1 %v4427_v35  ;;  %1797 = vmatprep.subr.bf16.mxu0 %v4399_v34  ;;  %v4502_v34 = vld [vmem:[#allocation5 + $0x2f0] ss:$36 sps:$4 sm:$0xff]  }
  0xec   : > { %1867 = vmatprep.subr.bf16.mxu1 %v4432_v36  ;;  %v4503_v35 = vld [vmem:[#allocation5 + $0xb0] ss:$36 sps:$4 sm:$0xff]  }
  0xed   : > { %v4504_v36 = vld [vmem:[#allocation5 + $0x530] ss:$36 sps:$4 sm:$0xff]  }
  0xee   : > { %1798 = vmatpush2.bf16.msra.mxu0 %v4397_v38  ;;  %v4505_v38 = vld [vmem:[#allocation5 + $0x2a8] ss:$36 sps:$4 sm:$0xff]  }
  0xef   : > { %1868 = vmatpush1.bf16.msra.mxu1 %v4430_v40  ;;  %1799 = vmatprep.subr.bf16.mxu0 %v4405_v39  ;;  %v4506_v39 = vld [vmem:[#allocation5 + $0x68] ss:$36 sps:$4 sm:$0xff]  }
  0xf0   : > { %1869 = vmatprep.subr.bf16.mxu1 %v4435_v41  ;;  %v4507_v40 = vld [vmem:[#allocation5 + $0x4e8] ss:$36 sps:$4 sm:$0xff]   ;;  %v4508_v41 = vld [vmem:[#allocation5 + $0x260] ss:$36 sps:$4 sm:$0xff]  }
  0xf2   : > { %1800 = vmatpush2.bf16.msra.mxu0 %v4403_v42  ;;  %v4509_v42 = vld [vmem:[#allocation5 + $0x20] ss:$36 sps:$4 sm:$0xff]  }
  0xf3   : > { %1870 = vmatpush1.bf16.msra.mxu1 %v4433_v43  ;;  %1801 = vmatprep.subr.bf16.mxu0 %v4411_v44  ;;  %v4510_v43 = vld [vmem:[#allocation5 + $0x4a0] ss:$36 sps:$4 sm:$0xff]  }
  0xf4   : > { %1871 = vmatprep.subr.bf16.mxu1 %v4438_v45 }
  0xf6   : > { %1802 = vmatpush2.bf16.msra.mxu0 %v4409_v46 }
  0xf7   : > { %1872 = vmatpush1.bf16.msra.mxu1 %v4436_v47  ;;  %1900 = vmatprep.subr.bf16.mxu0 %v4441_v48 }
  0xf8   : > { %1873 = vmatprep.subr.bf16.mxu1 %v4444_v49 }
  0xf9   : > { %1804 = vmatmul.mubr.bf16.vlgmr.msra.gmra.mxu0 %v5003_v12 }
  0xfa   : > { %1901 = vmatpush1.bf16.msra.mxu0 %v4439_v50  ;;  %1932 = vmatprep.mubr.bf16.mxu0 %v4814_v0 }
  0xfb   : > { %1874 = vmatpush2.bf16.msra.mxu1 %v4442_v51  ;;  %1902 = vmatprep.subr.bf16.mxu0 %v4447_v52 }
  0xfc   : > { %1875 = vmatprep.subr.bf16.mxu1 %v4450_v53 }
  0xfe   : > { %1903 = vmatpush1.bf16.msra.mxu0 %v4445_v55 }
  0xff   : > { %1876 = vmatpush2.bf16.msra.mxu1 %v4448_v56  ;;  %1904 = vmatprep.subr.bf16.mxu0 %v4453_v57 }
 0x100   : > { %1877 = vmatprep.subr.bf16.mxu1 %v4456_v58 }
 0x102   : > { %1905 = vmatpush1.bf16.msra.mxu0 %v4451_v59 }
 0x103   : > { %1878 = vmatpush2.bf16.msra.mxu1 %v4454_v60  ;;  %1906 = vmatprep.subr.bf16.mxu0 %v4459_v61 }
 0x104   : > { %1879 = vmatprep.subr.bf16.mxu1 %v4462_v62 }
 0x106   : > { %1907 = vmatpush1.bf16.msra.mxu0 %v4457_v63 }
 0x107   : > { %1880 = vmatpush2.bf16.msra.mxu1 %v4460_v1  ;;  %1908 = vmatprep.subr.bf16.mxu0 %v4465_v2 }
 0x108   : > { %1881 = vmatprep.subr.bf16.mxu1 %v4468_v3 }
 0x10a   : > { %1909 = vmatpush1.bf16.msra.mxu0 %v4463_v4 }
 0x10b   : > { %1882 = vmatpush2.bf16.msra.mxu1 %v4466_v5  ;;  %1910 = vmatprep.subr.bf16.mxu0 %v4471_v6 }
 0x10c   : > { %1883 = vmatprep.subr.bf16.mxu1 %v4474_v7 }
 0x10e   : > { %1911 = vmatpush1.bf16.msra.mxu0 %v4469_v8 }
 0x10f   : > { %1884 = vmatpush2.bf16.msra.mxu1 %v4472_v9  ;;  %1912 = vmatprep.subr.bf16.mxu0 %v4477_v10 }
 0x110   : > { %1885 = vmatprep.subr.bf16.mxu1 %v4480_v11 }
 0x112   : > { %1913 = vmatpush1.bf16.msra.mxu0 %v4475_v13 }
 0x113   : > { %1886 = vmatpush2.bf16.msra.mxu1 %v4478_v14  ;;  %1914 = vmatprep.subr.bf16.mxu0 %v4483_v15 }
 0x114   : > { %1887 = vmatprep.subr.bf16.mxu1 %v4486_v16 }
 0x116   : > { %1915 = vmatpush1.bf16.msra.mxu0 %v4481_v17 }
 0x117   : > { %1888 = vmatpush2.bf16.msra.mxu1 %v4484_v18  ;;  %3903 = vmatprep.subr.bf16.mxu0 %v4487_v19 }
 0x118   : > { %3989 = vmatprep.subr.bf16.mxu1 %v4815_v22 }
 0x119   : > { %1933 = vmatmul.mubr.bf16.vlgmr.msra.gmra.mxu0 %v4992_v37 }
 0x11a   : > { %1890 = vmatmul.mubr.bf16.vlgmr.msra.gmra.mxu1 %v5003_v12  ;;  %3904 = vmatpush3.bf16.msra.mxu0 %v4488_v20 }
 0x11b   : > { %3990 = vmatpush3.bf16.msra.mxu1 %v4489_v21  ;;  %3905 = vmatprep.subr.bf16.mxu0 %v4490_v23 }
 0x11c   : > { %3991 = vmatprep.subr.bf16.mxu1 %v4815_v22  ;;  %1975 = vmatprep.mubr.bf16.mxu0 %v4997_v54  ;;  %v4499_v54 = vld [vmem:[#allocation5 + $0x338] ss:$36 sps:$4 sm:$0xff]  }
 0x11d   : > { %4005 = vmatprep.mubr.msk.bf16.mxu1 %vm4816_vm0, %v4815_v22 }
 0x11e   : > { %3906 = vmatpush3.bf16.msra.mxu0 %v4491_v24 }
 0x11f   : > { %3992 = vmatpush3.bf16.msra.mxu1 %v4492_v25  ;;  %3907 = vmatprep.subr.bf16.mxu0 %v4493_v26 }
 0x120   : > { %3993 = vmatprep.subr.bf16.mxu1 %v4815_v22 }
 0x122   : > { %3908 = vmatpush3.bf16.msra.mxu0 %v4494_v27 }
 0x123   : > { %3994 = vmatpush3.bf16.msra.mxu1 %v4495_v28  ;;  %3909 = vmatprep.subr.bf16.mxu0 %v4496_v29 }
 0x124   : > { %3995 = vmatprep.subr.bf16.mxu1 %v4815_v22 }
 0x126   : > { %3910 = vmatpush3.bf16.msra.mxu0 %v4497_v30 }
 0x127   : > { %3996 = vmatpush3.bf16.msra.mxu1 %v4498_v31  ;;  %3911 = vmatprep.subr.bf16.mxu0 %v4499_v54 }
 0x128   : > { %3997 = vmatprep.subr.bf16.mxu1 %v4815_v22 }
 0x12a   : > { %3912 = vmatpush3.bf16.msra.mxu0 %v4500_v32 }
 0x12b   : > { %3998 = vmatpush3.bf16.msra.mxu1 %v4501_v33  ;;  %3913 = vmatprep.subr.bf16.mxu0 %v4502_v34 }
 0x12c   : > { %3999 = vmatprep.subr.bf16.mxu1 %v4815_v22 }
 0x12e   : > { %3914 = vmatpush3.bf16.msra.mxu0 %v4503_v35 }
 0x12f   : > { %4000 = vmatpush3.bf16.msra.mxu1 %v4504_v36  ;;  %3915 = vmatprep.subr.bf16.mxu0 %v4505_v38 }
 0x130   : > { %4001 = vmatprep.subr.bf16.mxu1 %v4815_v22 }
 0x132   : > { %3916 = vmatpush3.bf16.msra.mxu0 %v4506_v39 }
 0x133   : > { %4002 = vmatpush3.bf16.msra.mxu1 %v4507_v40  ;;  %3917 = vmatprep.subr.bf16.mxu0 %v4508_v41 }
 0x134   : > { %4003 = vmatprep.subr.bf16.mxu1 %v4815_v22 }
 0x136   : > { %3918 = vmatpush3.bf16.msra.mxu0 %v4509_v42 }
 0x137   : > { %4004 = vmatpush3.bf16.msra.mxu1 %v4510_v43  ;;  %4033 = vmatprep.subr.bf16.mxu0 %v4815_v22 }
 0x138   : > { %4009 = vmatprep.subr.bf16.mxu1 %v4815_v22 }
 0x139   : > { %1976 = vmatmul.mubr.bf16.vlgmr.msra.gmra.mxu0 %v5003_v12 }
 0x13a   : > { %4006 = vmatmul.mubr.bf16.vlgmr.msra.gmra.mxu1 %v4992_v37  ;;  %4035 = vmatprep.mubr.msk.bf16.mxu0 %vm4816_vm0, %v4815_v22  ;;  %v1676_v44 = vpop.f32.mrf.mxu1 }
 0x13b   : > { %4011 = vmatprep.mubr.msk.bf16.mxu1 %vm4816_vm0, %v4815_v22 }
 0x13c   : > { %v1678_v45 = vpop.f32.mrf.mxu1 }
 0x13e   : > { %v1680_v47 = vpop.f32.mrf.mxu1 }
 0x140   : > { %v1682_v51 = vpop.f32.mrf.mxu1 }
 0x159   : > { %v1633_v46 = vpop.f32.mrf.mxu0 }
 0x15a   : > { %v1677_v7 = vadd.f32 %v1676_v44, %v1633_v46 }
 0x15b   : > { %v1635_v48 = vpop.f32.mrf.mxu0 }
 0x15c   : > { %v1679_v49 = vadd.f32 %v1678_v45, %v1635_v48 }
 0x15d   : > { %v1637_v50 = vpop.f32.mrf.mxu0 }
 0x15e   : > { %v1681_v6 = vadd.f32 %v1680_v47, %v1637_v50 }
 0x15f   : > { %v1639_v52 = vpop.f32.mrf.mxu0 }
 0x160   : > { %v1683_v53 = vadd.f32 %v1682_v51, %v1639_v52  ;;  %v5045_v8 = vpack.c.bf16 %v1681_v6, %v1677_v7 }
 0x162   : > { %v5036_v55 = vpack.c.bf16 %v1683_v53, %v1679_v49  ;;  %v2025_v53 = vlaneseq }
 0x179   : > { %v1762_v37 = vpop.f32.mrf.mxu0 }
 0x17a   : > { %v1719_v12 = vpop.f32.mrf.mxu1 }
 0x17b   : > { %v1763_v56 = vadd.f32 %v1762_v37, %v1719_v12  ;;  %v1764_v58 = vpop.f32.mrf.mxu0  ;;  %v5070_v12 = vshrl.u32 %v2025_v53, 7  ;;  %v2029_v37 = vand.u32 127, %v2025_v53 }
 0x17c   : > { %v1721_v57 = vpop.f32.mrf.mxu1 }
 0x17d   : > { %v1766_v60 = vpop.f32.mrf.mxu0  ;;  %v1765_v1 = vadd.f32 %v1764_v58, %v1721_v57  ;;  %vm5073_vm2 = vcmp.ge.s32.totalorder %v5070_v12, %v2029_v37  ;;  %v2027_v58 = vadd.s32 8, %v5070_v12 }
 0x17e   : > { %v1723_v59 = vpop.f32.mrf.mxu1 }
 0x17f   : > { %v1767_v61 = vadd.f32 %v1766_v60, %v1723_v59  ;;  %v1768_v63 = vpop.f32.mrf.mxu0  ;;  %vm5081_vm4 = vcmp.ge.s32.totalorder %v2027_v58, %v2029_v37 }
 0x180   : > { %v1725_v62 = vpop.f32.mrf.mxu1 }
 0x181   : > { %v5038_v2 = vpack.c.bf16 %v1767_v61, %v1763_v56  ;;  %v1769_v3 = vadd.f32 %v1768_v63, %v1725_v62 }
 0x183   : > { %v5040_v4 = vpack.c.bf16 %v1769_v3, %v1765_v1 }
 0x185   : > { %v2040_v5 = vsel %vm2035_vm1, %v5040_v4, 0 }
 0x186   : > { %4010 = vmatpush3.bf16.xpose.msra.mxu1 %v2040_v5 }
 0x187   : > { %4015 = vmatprep.subr.bf16.mxu1 %v4815_v22 }
 0x18d   : > { %4012 = vmatmul.mubr.msk.bf16.vlgmr.msra.gmra.mxu1 %vm2035_vm1, %v5045_v8 }
 0x18e   : > { %4017 = vmatprep.mubr.msk.bf16.mxu1 %vm4816_vm0, %v4815_v22 }
 0x19a   : > { %v1848_v9 = vpop.f32.mrf.mxu1 }
 0x19c   : > { %v1850_v10 = vpop.f32.mrf.mxu1 }
 0x19e   : > { %v1852_v14 = vpop.f32.mrf.mxu1 }
 0x1a0   : > { %v1854_v18 = vpop.f32.mrf.mxu1 }
 0x1b9   : > { %v1805_v11 = vpop.f32.mrf.mxu0 }
 0x1ba   : > { %v1849_v15 = vadd.f32 %v1848_v9, %v1805_v11 }
 0x1bb   : > { %v1807_v13 = vpop.f32.mrf.mxu0 }
 0x1bc   : > { %v1851_v16 = vadd.f32 %v1850_v10, %v1807_v13 }
 0x1bd   : > { %v1809_v17 = vpop.f32.mrf.mxu0 }
 0x1be   : > { %v1853_v19 = vadd.f32 %v1852_v14, %v1809_v17 }
 0x1bf   : > { %v1811_v20 = vpop.f32.mrf.mxu0 }
 0x1c0   : > { %v5051_v21 = vpack.c.bf16 %v1853_v19, %v1849_v15  ;;  %v1855_v23 = vadd.f32 %v1854_v18, %v1811_v20 }
 0x1c2   : > { %v2290_v24 = vsel %vm2035_vm1, %v5051_v21, 0  ;;  %v5055_v25 = vpack.c.bf16 %v1855_v23, %v1851_v16 }
 0x1c3   : > { %4034 = vmatpush3.bf16.xpose.msra.mxu0 %v2290_v24 }
 0x1c4   : > { %4045 = vmatprep.subr.bf16.mxu0 %v4815_v22 }
 0x1ca   : > { %4036 = vmatmul.mubr.msk.bf16.vlgmr.msra.gmra.mxu0 %vm2035_vm1, %v5036_v55 }
 0x1cb   : > { %4047 = vmatprep.mubr.msk.bf16.mxu0 %vm4816_vm0, %v4815_v22 }
 0x1d9   : > { %v1934_v27 = vpop.f32.mrf.mxu0 }
 0x1da   : > { %v1891_v26 = vpop.f32.mrf.mxu1 }
 0x1db   : > { %v1936_v29 = vpop.f32.mrf.mxu0  ;;  %v1935_v30 = vadd.f32 %v1934_v27, %v1891_v26 }
 0x1dc   : > { %v1893_v28 = vpop.f32.mrf.mxu1 }
 0x1dd   : > { %v1937_v31 = vadd.f32 %v1936_v29, %v1893_v28  ;;  %v1938_v32 = vpop.f32.mrf.mxu0 }
 0x1de   : > { %v1895_v54 = vpop.f32.mrf.mxu1 }
 0x1df   : > { %v1939_v33 = vadd.f32 %v1938_v32, %v1895_v54  ;;  %v1940_v35 = vpop.f32.mrf.mxu0 }
 0x1e0   : > { %v1897_v34 = vpop.f32.mrf.mxu1 }
 0x1e1   : > { %v5062_v36 = vpack.c.bf16 %v1939_v33, %v1935_v30  ;;  %v1941_v38 = vadd.f32 %v1940_v35, %v1897_v34  ;;  %v2539_v33 = vsel %vm2035_vm1, %v5055_v25, 0 }
 0x1e3   : > { %v5064_v39 = vpack.c.bf16 %v1941_v38, %v1937_v31  ;;  %4016 = vmatpush3.bf16.msra.mxu1 %v5062_v36 }
 0x1e4   : > { %4021 = vmatprep.subr.bf16.mxu1 %v4815_v22 }
 0x1f9   : > { %v3919_v40 = vpop.f32.mrf.mxu0 }
 0x1fa   : > { %v2018_v41 = vpop.f32.mrf.mxu1 }
 0x1fb   : > { %v3920_v42 = vpop.f32.mrf.mxu0 }
 0x1fc   : > { %v4007_v43 = vpop.f32.mrf.mxu1  ;;  %v3921_v44 = vadd.f32 %v3920_v42, %v3919_v40 }
 0x1fd   : > { %v3922_v45 = vpop.f32.mrf.mxu0 }
 0x1fe   : > { %v2021_v46 = vpop.f32.mrf.mxu1  ;;  %v2019_v47 = vadd.f32 %v3921_v44, %v2018_v41 }
 0x1ff   : > { %v3923_v48 = vpop.f32.mrf.mxu0 }
 0x200   : > { %v4008_v49 = vpop.f32.mrf.mxu1  ;;  %v3924_v50 = vadd.f32 %v3923_v48, %v3922_v45 }
 0x202   : > { %v2022_v51 = vadd.f32 %v3924_v50, %v2021_v46 }
 0x204   : > { %v5068_v52 = vpack.c.bf16 %v2022_v51, %v2019_v47 }
 0x24d   : > { %v2076_v56 = vpop.f32.mrf.mxu1 }
 0x24e   : > { %v2083_v59 = vmul.f32 0.05103104, %v2076_v56 }
 0x24f   : > { %v4013_v60 = vpop.f32.mrf.mxu1 }
 0x250   : > { %v2085_v61 = vsel %vm5073_vm2, %v2083_v59, -inf }
 0x251   : > { %v2079_v62 = vpop.f32.mrf.mxu1  ;;  %v2088_v63 = vsel %vm2087_vm3, %v2085_v61, -inf }
 0x252   : > { %v2084_v3 = vmul.f32 0.05103104, %v2079_v62  ;;  %2089 = vmax.xlane.f32.xlu0 %v2088_v63 }
 0x253   : > { %v4014_v5 = vpop.f32.mrf.mxu1 }
 0x254   : > { %v2086_v6 = vsel %vm5081_vm4, %v2084_v3, -inf }
 0x255   : > { %v2091_v7 = vsel %vm2087_vm3, %v2086_v6, -inf }
 0x256   : > { %2092 = vmax.xlane.f32.xlu0 %v2091_v7 }
 0x26c   : > { %2159 = vrot.lane.b32.xlu0 %v5040_v4, %s4817_s21 }
 0x270   : > { %2657 = vrot.lane.b32.xlu0 %v5055_v25, %s4817_s21 }
 0x28a   : > { %v5092_v9 = vpop.f32.mrf.mxu0 }
 0x28b   : > { %v2333_v49 = vmul.f32 0.05103104, %v5092_v9 }
 0x28c   : > { %v4037_v10 = vpop.f32.mrf.mxu0 }
 0x28d   : > { %v2335_v62 = vsel %vm5073_vm2, %v2333_v49, -inf }
 0x28e   : > { %v5094_v11 = vpop.f32.mrf.mxu0 }
 0x28f   : > { %v2334_v63 = vmul.f32 0.05103104, %v5094_v11 }
 0x290   : > { %v4038_v13 = vpop.f32.mrf.mxu0 }
 0x291   : > { %v2336_v11 = vsel %vm5081_vm4, %v2334_v63, -inf }
 0x2db   : > { %v2090_v14 = vpop.xlane.xlu0 %2089 }
 0x2dc   : > { %v2094_v15 = vsub.f32 %v2085_v61, %v2090_v14  ;;  %v2337_v14 = vsel %vm2087_vm3, %v2335_v62, -inf }
 0x2de   : > { %v2096_v16 = vmul.f32 1.442695, %v2094_v15 }
 0x2df   : > { %v2093_v17 = vpop.xlane.xlu0 %2092 }
 0x2e0   : > { %4607 = vpow2.f32 %v2096_v16  ;;  %v2095_v18 = vsub.f32 %v2086_v6, %v2093_v17 }
 0x2e2   : > { %v2098_v19 = vmul.f32 1.442695, %v2095_v18 }
 0x2e3   : > { %v2160_v32 = vpop.permute.xlu0 %2159 }
 0x2e4   : > { %4609 = vpow2.f32 %v2098_v19  ;;  %v2165_v35 = vsel %vm2035_vm1, %v2160_v32, 0 }
 0x2e7   : > { %v2658_v38 = vpop.permute.xlu0 %2657 }
 0x2e8   : > { %v2663_v25 = vsel %vm2035_vm1, %v2658_v38, 0 }
 0x2ed   : > { %v4608_v20 = vpop.eup %4607 }
 0x2ee   : > { %v2100_v4 = vsel %vm2087_vm3, %v4608_v20, 0.0 }
 0x2ef   : > { %2101 = vadd.xlane.f32.xlu1 %v2100_v4 }
 0x2f1   : > { %v4610_v23 = vpop.eup %4609 }
 0x2f2   : > { %v2103_v24 = vsel %vm2087_vm3, %v4610_v23, 0.0 }
 0x2f3   : > { %2104 = vadd.xlane.f32.xlu1 %v2103_v24 }
 0x304   : > { %2156 = vrot.lane.b32.xlu1 %v5045_v8, %s4817_s21 }
 0x308   : > { %2408 = vrot.lane.b32.xlu1 %v5051_v21, %s4817_s21 }
 0x30c   : > { %2405 = vrot.lane.b32.xlu1 %v5036_v55, %s4817_s21 }
 0x310   : > { %2654 = vrot.lane.b32.xlu1 %v5038_v2, %s4817_s21 }
 0x378   : > { %v2102_v26 = vpop.xlane.xlu1 %2101 }
 0x379   : > { %4611 = vrcp.f32 %v2102_v26 }
 0x37c   : > { %v2105_v27 = vpop.xlane.xlu1 %2104 }
 0x37d   : > { %4613 = vrcp.f32 %v2105_v27 }
 0x380   : > { %v2157_v28 = vpop.permute.xlu1 %2156 }
 0x384   : > { %v2409_v29 = vpop.permute.xlu1 %2408 }
 0x385   : > { %v2414_v30 = vsel %vm2035_vm1, %v2409_v29, 0 }
 0x386   : > { %4046 = vmatpush3.bf16.xpose.msra.mxu0 %v2414_v30  ;;  %v4612_v8 = vpop.eup %4611 }
 0x387   : > { %4057 = vmatprep.subr.bf16.mxu0 %v4815_v22  ;;  %v2108_v21 = vmul.f32 %v4612_v8, %v4608_v20  ;;  %v2340_v20 = vsel %vm2087_vm3, %v2336_v11, -inf }
 0x388   : > { %v2406_v55 = vpop.permute.xlu1 %2405 }
 0x38a   : > { %v4614_v31 = vpop.eup %4613 }
 0x38b   : > { %v2109_v54 = vmul.f32 %v4614_v31, %v4610_v23 }
 0x38c   : > { %v2655_v40 = vpop.permute.xlu1 %2654 }
 0x38d   : > { %4048 = vmatmul.mubr.msk.bf16.vlgmr.msra.gmra.mxu0 %vm2035_vm1, %v2406_v55  ;;  %v2110_v34 = vpack.c.bf16 %v2109_v54, %v2108_v21 }
 0x38e   : > { %4058 = vmatpush3.bf16.xpose.msra.mxu0 %v2539_v33  ;;  %4059 = vmatprep.mubr.msk.bf16.mxu0 %vm4816_vm0, %v4815_v22 }
 0x38f   : > { %4018 = vmatmul.mubr.msk.bf16.vlgmr.msra.gmra.mxu1 %vm2087_vm3, %v2110_v34  ;;  %4069 = vmatprep.subr.bf16.mxu0 %v4815_v22 }
 0x390   : > { %4022 = vmatpush3.bf16.xpose.msra.mxu1 %v2165_v35  ;;  %4023 = vmatprep.mubr.msk.bf16.mxu1 %vm4816_vm0, %v4815_v22 }
 0x391   : > { %4027 = vmatprep.subr.bf16.mxu1 %v4815_v22 }
 0x395   : > { %4060 = vmatmul.mubr.msk.bf16.vlgmr.msra.gmra.mxu0 %vm2035_vm1, %v5038_v2 }
 0x396   : > { %4070 = vmatpush3.bf16.xpose.msra.mxu0 %v2663_v25  ;;  %4071 = vmatprep.mubr.msk.bf16.mxu0 %vm4816_vm0, %v4815_v22 }
 0x397   : > { %4024 = vmatmul.mubr.msk.bf16.vlgmr.msra.gmra.mxu1 %vm2035_vm1, %v2157_v28 }
 0x398   : > { %4029 = vmatprep.mubr.msk.bf16.mxu1 %vm4816_vm0, %v4815_v22 }
 0x39d   : > { %4072 = vmatmul.mubr.msk.bf16.vlgmr.msra.gmra.mxu0 %vm2035_vm1, %v2655_v40 }
 0x44d   : > { %v2450_v41 = vpop.f32.mrf.mxu0 }
 0x44e   : > { %v2457_v15 = vmul.f32 0.05103104, %v2450_v41 }
 0x44f   : > { %v5128_v42 = vpop.f32.mrf.mxu1  ;;  %v4049_v43 = vpop.f32.mrf.mxu0 }
 0x450   : > { %v2459_v26 = vsel %vm5073_vm2, %v2457_v15, -inf }
 0x451   : > { %v4019_v44 = vpop.f32.mrf.mxu1  ;;  %v2453_v45 = vpop.f32.mrf.mxu0  ;;  %v2461_v28 = vsel %vm2087_vm3, %v2459_v26, -inf }
 0x452   : > { %v2458_v3 = vmul.f32 0.05103104, %v2453_v45 }
 0x453   : > { %v5130_v46 = vpop.f32.mrf.mxu1  ;;  %v4050_v2 = vpop.f32.mrf.mxu0 }
 0x454   : > { %v2460_v17 = vsel %vm5081_vm4, %v2458_v3, -inf }
 0x455   : > { %v4020_v47 = vpop.f32.mrf.mxu1  ;;  %v2575_v48 = vpop.f32.mrf.mxu0  ;;  %v2464_v4 = vsel %vm2087_vm3, %v2460_v17, -inf }
 0x456   : > { %v2582_v23 = vmul.f32 0.05103104, %v2575_v48 }
 0x457   : > { %v2201_v50 = vpop.f32.mrf.mxu1  ;;  %v4061_v51 = vpop.f32.mrf.mxu0 }
 0x458   : > { %v2208_v53 = vmul.f32 0.05103104, %v2201_v50  ;;  %v2584_v8 = vsel %vm5073_vm2, %v2582_v23, -inf }
 0x459   : > { %v4025_v37 = vpop.f32.mrf.mxu1  ;;  %v2578_v56 = vpop.f32.mrf.mxu0  ;;  %v2586_v21 = vsel %vm2087_vm3, %v2584_v8, -inf }
 0x45a   : > { %v5135_v58 = vsel %vm5073_vm2, %v2208_v53, -inf  ;;  %v2583_v16 = vmul.f32 0.05103104, %v2578_v56 }
 0x45b   : > { %v2204_v59 = vpop.f32.mrf.mxu1  ;;  %v4062_v60 = vpop.f32.mrf.mxu0  ;;  %v2212_v61 = vsel %vm2087_vm3, %v5135_v58, -inf }
 0x45c   : > { %v2209_v5 = vmul.f32 0.05103104, %v2204_v59  ;;  %2213 = vmax.xlane.f32.xlu0 %v2212_v61  ;;  %v2585_v27 = vsel %vm5081_vm4, %v2583_v16, -inf }
 0x45d   : > { %v4026_v6 = vpop.f32.mrf.mxu1  ;;  %v2699_v7 = vpop.f32.mrf.mxu0  ;;  %v2589_v29 = vsel %vm2087_vm3, %v2585_v27, -inf }
 0x45e   : > { %v2211_v9 = vsel %vm5081_vm4, %v2209_v5, -inf  ;;  %v2706_v30 = vmul.f32 0.05103104, %v2699_v7 }
 0x45f   : > { %v4073_v10 = vpop.f32.mrf.mxu0  ;;  %v2215_v13 = vsel %vm2087_vm3, %v2211_v9, -inf }
 0x460   : > { %2216 = vmax.xlane.f32.xlu1 %v2215_v13  ;;  %2338 = vmax.xlane.f32.xlu0 %v2337_v14  ;;  %v2708_v32 = vsel %vm5073_vm2, %v2706_v30, -inf }
 0x461   : > { %v2702_v18 = vpop.f32.mrf.mxu0  ;;  %v2710_v55 = vsel %vm2087_vm3, %v2708_v32, -inf }
 0x462   : > { %v2707_v24 = vmul.f32 0.05103104, %v2702_v18 }
 0x463   : > { %v4074_v19 = vpop.f32.mrf.mxu0 }
 0x464   : > { %2341 = vmax.xlane.f32.xlu0 %v2340_v20  ;;  %2465 = vmax.xlane.f32.xlu1 %v2464_v4  ;;  %v2709_v31 = vsel %vm5081_vm4, %v2707_v24, -inf }
 0x465   : > { %v2713_v54 = vsel %vm2087_vm3, %v2709_v31, -inf }
 0x468   : > { %2462 = vmax.xlane.f32.xlu0 %v2461_v28  ;;  %2590 = vmax.xlane.f32.xlu1 %v2589_v29 }
 0x46c   : > { %2587 = vmax.xlane.f32.xlu0 %v2586_v21  ;;  %2714 = vmax.xlane.f32.xlu1 %v2713_v54 }
 0x470   : > { %2711 = vmax.xlane.f32.xlu0 %v2710_v55 }
 0x4e5   : > { %v2214_v33 = vpop.xlane.xlu0 %2213 }
 0x4e6   : > { %v2218_v49 = vsub.f32 %v5135_v58, %v2214_v33 }
 0x4e8   : > { %v2220_v59 = vmul.f32 1.442695, %v2218_v49 }
 0x4e9   : > { %v2217_v34 = vpop.xlane.xlu1 %2216  ;;  %v2339_v35 = vpop.xlane.xlu0 %2338 }
 0x4ea   : > { %v2343_v38 = vsub.f32 %v2335_v62, %v2339_v35  ;;  %v2219_v50 = vsub.f32 %v2211_v9, %v2217_v34 }
 0x4ec   : > { %v2345_v25 = vmul.f32 1.442695, %v2343_v38  ;;  %v2222_v60 = vmul.f32 1.442695, %v2219_v50 }
 0x4ed   : > { %v2342_v40 = vpop.xlane.xlu0 %2341  ;;  %v2466_v1 = vpop.xlane.xlu1 %2465 }
 0x4ee   : > { %v2344_v41 = vsub.f32 %v2336_v11, %v2342_v40  ;;  %v2468_v43 = vsub.f32 %v2460_v17, %v2466_v1  ;;  %4615 = vpow2.f32 %v2345_v25 }
 0x4f0   : > { %v2347_v44 = vmul.f32 1.442695, %v2344_v41  ;;  %v2471_v45 = vmul.f32 1.442695, %v2468_v43 }
 0x4f1   : > { %v2463_v2 = vpop.xlane.xlu0 %2462  ;;  %v2591_v47 = vpop.xlane.xlu1 %2590 }
 0x4f2   : > { %4617 = vpow2.f32 %v2347_v44  ;;  %v2467_v57 = vsub.f32 %v2459_v26, %v2463_v2  ;;  %v2593_v48 = vsub.f32 %v2585_v27, %v2591_v47 }
 0x4f3   : > { %4619 = vpow2.f32 %v2471_v45 }
 0x4f4   : > { %v2469_v51 = vmul.f32 1.442695, %v2467_v57  ;;  %v2596_v53 = vmul.f32 1.442695, %v2593_v48 }
 0x4f5   : > { %v2588_v37 = vpop.xlane.xlu0 %2587  ;;  %v2715_v62 = vpop.xlane.xlu1 %2714 }
 0x4f6   : > { %4621 = vpow2.f32 %v2469_v51  ;;  %v2592_v56 = vsub.f32 %v2584_v8, %v2588_v37  ;;  %v2717_v58 = vsub.f32 %v2709_v31, %v2715_v62 }
 0x4f7   : > { %4623 = vpow2.f32 %v2596_v53 }
 0x4f8   : > { %v2594_v61 = vmul.f32 1.442695, %v2592_v56  ;;  %v2720_v10 = vmul.f32 1.442695, %v2717_v58 }
 0x4f9   : > { %v2712_v63 = vpop.xlane.xlu0 %2711 }
 0x4fa   : > { %4625 = vpow2.f32 %v2594_v61  ;;  %v2716_v3 = vsub.f32 %v2708_v32, %v2712_v63 }
 0x4fb   : > { %4627 = vpow2.f32 %v2220_v59  ;;  %v5168_v5 = vpop.eup %4615 }
 0x4fc   : > { %4629 = vpow2.f32 %v2222_v60  ;;  %v2718_v6 = vmul.f32 1.442695, %v2716_v3  ;;  %v2349_v7 = vsel %vm2087_vm3, %v5168_v5, 0.0 }
 0x4fd   : > { %2350 = vadd.xlane.f32.xlu0 %v2349_v7  ;;  %v4513_v7 = vld [vmem:[#allocation7 + $0xac] ss:$12 sps:$4 sm:$0xff]  }
 0x4fe   : > { %4631 = vpow2.f32 %v2718_v6  ;;  %v4511_v6 = vld [vmem:[#allocation7 + $0xa8] ss:$12 sps:$4 sm:$0xff]   ;;  %3311 = vmatprep.subr.bf16.mxu0 %v4513_v7 }
 0x4ff   : > { %v5172_v9 = vpop.eup %4617  ;;  %4633 = vpow2.f32 %v2720_v10  ;;  %3312 = vmatpush1.bf16.msra.mxu0 %v4511_v6  ;;  %v4514_v10 = vld [vmem:[#allocation7 + $0x90] ss:$12 sps:$4 sm:$0xff]   ;;  %v4577_v6 = vld [vmem:[#allocation7 + $0x180] ss:$12 sps:$4 sm:$0xff]  }
 0x500   : > { %v2352_v13 = vsel %vm2087_vm3, %v5172_v9, 0.0  ;;  %v5176_v14 = vpop.eup %4619 }
 0x501   : > { %2353 = vadd.xlane.f32.xlu1 %v2352_v13  ;;  %v2476_v11 = vsel %vm2087_vm3, %v5176_v14, 0.0  ;;  %v4519_v13 = vld [vmem:[#allocation7 + $0x7c] ss:$12 sps:$4 sm:$0xff]  }
 0x503   : > { %v5178_v15 = vpop.eup %4621 }
 0x504   : > { %v2473_v16 = vsel %vm2087_vm3, %v5178_v15, 0.0  ;;  %v5184_v17 = vpop.eup %4623 }
 0x505   : > { %2474 = vadd.xlane.f32.xlu0 %v2473_v16  ;;  %2477 = vadd.xlane.f32.xlu1 %v2476_v11  ;;  %v2601_v4 = vsel %vm2087_vm3, %v5184_v17, 0.0  ;;  %v4517_v16 = vld [vmem:[#allocation7 + $0x78] ss:$12 sps:$4 sm:$0xff]   ;;  %v4543_v11 = vld [vmem:[#allocation7 + $0x214] ss:$12 sps:$4 sm:$0xff]  }
 0x507   : > { %v5186_v18 = vpop.eup %4625 }
 0x508   : > { %v4628_v19 = vpop.eup %4627  ;;  %v2598_v20 = vsel %vm2087_vm3, %v5186_v18, 0.0 }
 0x509   : > { %v4630_v23 = vpop.eup %4629  ;;  %2599 = vadd.xlane.f32.xlu0 %v2598_v20  ;;  %2602 = vadd.xlane.f32.xlu1 %v2601_v4  ;;  %v2224_v24 = vsel %vm2087_vm3, %v4628_v19, 0.0  ;;  %v4525_v20 = vld [vmem:[#allocation7 + $0x4c] ss:$12 sps:$4 sm:$0xff]  }
 0x50a   : > { %v2227_v26 = vsel %vm2087_vm3, %v4630_v23, 0.0  ;;  %v4547_v4 = vld [vmem:[#allocation7 + $0x1f8] ss:$12 sps:$4 sm:$0xff]  }
 0x50b   : > { %v5194_v27 = vpop.eup %4631 }
 0x50c   : > { %v2722_v28 = vsel %vm2087_vm3, %v5194_v27, 0.0  ;;  %v5198_v29 = vpop.eup %4633 }
 0x50d   : > { %2225 = vadd.xlane.f32.xlu0 %v2224_v24  ;;  %2228 = vadd.xlane.f32.xlu1 %v2227_v26  ;;  %v2725_v30 = vsel %vm2087_vm3, %v5198_v29, 0.0  ;;  %v4528_v24 = vld [vmem:[#allocation7 + $0x34] ss:$12 sps:$4 sm:$0xff]   ;;  %v4526_v26 = vld [vmem:[#allocation7 + $0x30] ss:$12 sps:$4 sm:$0xff]  }
 0x511   : > { %2723 = vadd.xlane.f32.xlu1 %v2722_v28  ;;  %v4529_v28 = vld [vmem:[#allocation7 + $0x18] ss:$12 sps:$4 sm:$0xff]  }
 0x515   : > { %2726 = vadd.xlane.f32.xlu1 %v2725_v30  ;;  %v4532_v30 = vld [vmem:[#allocation7] ss:$12 sps:$4 sm:$0xff]  }
 0x523   : > { %2236 = vrot.lane.b32.xlu0 %v5062_v36, %s4817_s21 }
 0x526   : > { %2485 = vrot.lane.b32.xlu1 %v5064_v39, %s4817_s21 }
 0x527   : > { %2734 = vrot.lane.b32.xlu0 %v5068_v52, %s4817_s21 }
 0x586   : > { %v2351_v8 = vpop.xlane.xlu0 %2350 }
 0x58a   : > { %v2354_v31 = vpop.xlane.xlu1 %2353 }
 0x58e   : > { %v2475_v21 = vpop.xlane.xlu0 %2474  ;;  %v2478_v54 = vpop.xlane.xlu1 %2477 }
 0x592   : > { %v2600_v32 = vpop.xlane.xlu0 %2599  ;;  %v2603_v55 = vpop.xlane.xlu1 %2602 }
 0x596   : > { %v2226_v33 = vpop.xlane.xlu0 %2225  ;;  %v2229_v34 = vpop.xlane.xlu1 %2228 }
 0x597   : > { %4635 = vrcp.f32 %v2226_v33 }
 0x598   : > { %4637 = vrcp.f32 %v2229_v34 }
 0x599   : > { %4639 = vrcp.f32 %v2354_v31  ;;  %v4538_v31 = vld [vmem:[#allocation7 + $0x168] ss:$12 sps:$4 sm:$0xff]  }
 0x59a   : > { %v2237_v35 = vpop.permute.xlu0 %2236  ;;  %4641 = vrcp.f32 %v2351_v8  ;;  %v2724_v40 = vpop.xlane.xlu1 %2723  ;;  %v4540_v8 = vld [vmem:[#allocation7 + $0x16c] ss:$12 sps:$4 sm:$0xff]  }
 0x59b   : > { %4028 = vmatpush3.bf16.msra.mxu1 %v2237_v35  ;;  %4643 = vrcp.f32 %v2475_v21  ;;  %v4546_v21 = vld [vmem:[#allocation7 + $0x154] ss:$12 sps:$4 sm:$0xff]  }
 0x59c   : > { %4039 = vmatprep.subr.bf16.mxu1 %v4815_v22  ;;  %4645 = vrcp.f32 %v2478_v54  ;;  %v4544_v54 = vld [vmem:[#allocation7 + $0x150] ss:$12 sps:$4 sm:$0xff]  }
 0x59d   : > { %4647 = vrcp.f32 %v2600_v32 }
 0x59e   : > { %4649 = vrcp.f32 %v2603_v55  ;;  %v2727_v45 = vpop.xlane.xlu1 %2726  ;;  %v2735_v63 = vpop.permute.xlu0 %2734 }
 0x59f   : > { %4651 = vrcp.f32 %v2727_v45  ;;  %v4556_v45 = vld [vmem:[#allocation7 + $0x120] ss:$12 sps:$4 sm:$0xff]  }
 0x5a0   : > { %4653 = vrcp.f32 %v2724_v40  ;;  %v4550_v40 = vld [vmem:[#allocation7 + $0x138] ss:$12 sps:$4 sm:$0xff]  }
 0x5a2   : > { %v2486_v50 = vpop.permute.xlu1 %2485 }
 0x5a4   : > { %v4636_v36 = vpop.eup %4635 }
 0x5a5   : > { %v4638_v38 = vpop.eup %4637  ;;  %v2232_v25 = vmul.f32 %v4636_v36, %v4628_v19  ;;  %v4520_v19 = vld [vmem:[#allocation7 + $0x60] ss:$12 sps:$4 sm:$0xff]   ;;  %v4552_v36 = vld [vmem:[#allocation7 + $0x13c] ss:$12 sps:$4 sm:$0xff]  }
 0x5a6   : > { %v2233_v1 = vmul.f32 %v4638_v38, %v4630_v23  ;;  %v4640_v43 = vpop.eup %4639  ;;  %v4523_v23 = vld [vmem:[#allocation7 + $0x48] ss:$12 sps:$4 sm:$0xff]   ;;  %v4555_v38 = vld [vmem:[#allocation7 + $0x1e4] ss:$12 sps:$4 sm:$0xff]  }
 0x5a7   : > { %v4642_v44 = vpop.eup %4641  ;;  %v2358_v2 = vmul.f32 %v4640_v43, %v5172_v9  ;;  %v4516_v9 = vld [vmem:[#allocation7 + $0x94] ss:$12 sps:$4 sm:$0xff]   ;;  %v4561_v43 = vld [vmem:[#allocation7 + $0x1cc] ss:$12 sps:$4 sm:$0xff]  }
 0x5a8   : > { %v2234_v41 = vpack.c.bf16 %v2233_v1, %v2232_v25  ;;  %v2357_v47 = vmul.f32 %v4642_v44, %v5168_v5  ;;  %v4644_v57 = vpop.eup %4643  ;;  %3313 = vmatprep.subr.bf16.mxu0 %v4516_v9  ;;  %v4553_v1 = vld [vmem:[#allocation7 + $0x1e0] ss:$12 sps:$4 sm:$0xff]   ;;  %v4582_v9 = vld [vmem:[#allocation7 + $0xc4] ss:$12 sps:$4 sm:$0xff]  }
 0x5a9   : > { %v4646_v49 = vpop.eup %4645  ;;  %3314 = vmatpush1.bf16.msra.mxu0 %v4514_v10  ;;  %v4583_v10 = vld [vmem:[#allocation7 + $0x170] ss:$12 sps:$4 sm:$0xff]  }
 0x5aa   : > { %4030 = vmatmul.mubr.msk.bf16.vlgmr.msra.gmra.mxu1 %vm2087_vm3, %v2234_v41  ;;  %v2359_v48 = vpack.c.bf16 %v2358_v2, %v2357_v47  ;;  %v2482_v51 = vmul.f32 %v4646_v49, %v5176_v14  ;;  %v4648_v53 = vpop.eup %4647  ;;  %v4535_v14 = vld [vmem:[#allocation7 + $0x228] ss:$12 sps:$4 sm:$0xff]   ;;  %3315 = vmatprep.subr.bf16.mxu0 %v4519_v13  ;;  %v4558_v41 = vld [vmem:[#allocation7 + $0x124] ss:$12 sps:$4 sm:$0xff]  }
 0x5ab   : > { %4040 = vmatpush3.bf16.msra.mxu1 %v5064_v39  ;;  %4041 = vmatprep.mubr.msk.bf16.mxu1 %vm4816_vm0, %v4815_v22  ;;  %v2481_v39 = vmul.f32 %v4644_v57, %v5178_v15  ;;  %v4650_v56 = vpop.eup %4649  ;;  %v2606_v59 = vmul.f32 %v4648_v53, %v5186_v18  ;;  %v4537_v15 = vld [vmem:[#allocation7 + $0x22c] ss:$12 sps:$4 sm:$0xff]   ;;  %v4541_v18 = vld [vmem:[#allocation7 + $0x210] ss:$12 sps:$4 sm:$0xff]   ;;  %v4559_v2 = vld [vmem:[#allocation7 + $0x1c8] ss:$12 sps:$4 sm:$0xff]  }
 0x5ac   : > { %4051 = vmatprep.subr.bf16.mxu1 %v4815_v22  ;;  %v2607_v60 = vmul.f32 %v4650_v56, %v5184_v17  ;;  %v4652_v62 = vpop.eup %4651  ;;  %v4522_v17 = vld [vmem:[#allocation7 + $0x64] ss:$12 sps:$4 sm:$0xff]   ;;  %v4564_v57 = vld [vmem:[#allocation7 + $0x10c] ss:$12 sps:$4 sm:$0xff]   ;;  %v4562_v49 = vld [vmem:[#allocation7 + $0x108] ss:$12 sps:$4 sm:$0xff]  }
 0x5ad   : > { %v2483_v37 = vpack.c.bf16 %v2482_v51, %v2481_v39  ;;  %v4654_v3 = vpop.eup %4653  ;;  %3316 = vmatpush1.bf16.msra.mxu0 %v4517_v16  ;;  %v4567_v39 = vld [vmem:[#allocation7 + $0x1b4] ss:$12 sps:$4 sm:$0xff]   ;;  %v4573_v53 = vld [vmem:[#allocation7 + $0x19c] ss:$12 sps:$4 sm:$0xff]  }
 0x5ae   : > { %v2608_v61 = vpack.c.bf16 %v2607_v60, %v2606_v59  ;;  %v2730_v5 = vmul.f32 %v4654_v3, %v5194_v27  ;;  %3317 = vmatprep.subr.bf16.mxu0 %v4522_v17  ;;  %v4531_v27 = vld [vmem:[#allocation7 + $0x1c] ss:$12 sps:$4 sm:$0xff]   ;;  %v4570_v51 = vld [vmem:[#allocation7 + $0xf4] ss:$12 sps:$4 sm:$0xff]   ;;  %v4571_v60 = vld [vmem:[#allocation7 + $0x198] ss:$12 sps:$4 sm:$0xff]  }
 0x5af   : > { %v4568_v59 = vld [vmem:[#allocation7 + $0xf0] ss:$12 sps:$4 sm:$0xff]  }
 0x5b0   : > { %v4576_v3 = vld [vmem:[#allocation7 + $0xdc] ss:$12 sps:$4 sm:$0xff]  }
 0x5b1   : > { %3318 = vmatpush1.bf16.msra.mxu0 %v4520_v19 }
 0x5b2   : > { %4042 = vmatmul.mubr.msk.bf16.vlgmr.msra.gmra.mxu1 %vm2087_vm3, %v2359_v48  ;;  %3319 = vmatprep.subr.bf16.mxu0 %v4525_v20 }
 0x5b3   : > { %4052 = vmatpush3.bf16.msra.mxu1 %v2486_v50  ;;  %4053 = vmatprep.mubr.msk.bf16.mxu1 %vm4816_vm0, %v4815_v22  ;;  %v4565_v50 = vld [vmem:[#allocation7 + $0x1b0] ss:$12 sps:$4 sm:$0xff]  }
 0x5b4   : > { %4063 = vmatprep.subr.bf16.mxu1 %v4815_v22 }
 0x5b5   : > { %3320 = vmatpush1.bf16.msra.mxu0 %v4523_v23 }
 0x5b6   : > { %3321 = vmatprep.subr.bf16.mxu0 %v4528_v24 }
 0x5b9   : > { %3322 = vmatpush1.bf16.msra.mxu0 %v4526_v26 }
 0x5ba   : > { %4054 = vmatmul.mubr.msk.bf16.vlgmr.msra.gmra.mxu1 %vm2087_vm3, %v2483_v37  ;;  %3323 = vmatprep.subr.bf16.mxu0 %v4531_v27 }
 0x5bb   : > { %4064 = vmatpush3.bf16.msra.mxu1 %v5068_v52  ;;  %4065 = vmatprep.mubr.msk.bf16.mxu1 %vm4816_vm0, %v4815_v22  ;;  %v2731_v52 = vmul.f32 %v4652_v62, %v5198_v29  ;;  %v4534_v29 = vld [vmem:[#allocation7 + $0x4] ss:$12 sps:$4 sm:$0xff]  }
 0x5bc   : > { %4075 = vmatprep.subr.bf16.mxu1 %v4815_v22 }
 0x5bd   : > { %v2732_v58 = vpack.c.bf16 %v2731_v52, %v2730_v5  ;;  %3324 = vmatpush1.bf16.msra.mxu0 %v4529_v28  ;;  %v4579_v52 = vld [vmem:[#allocation7 + $0x184] ss:$12 sps:$4 sm:$0xff]  }
 0x5be   : > { %3325 = vmatprep.subr.bf16.mxu0 %v4534_v29 }
 0x5c1   : > { %3326 = vmatpush1.bf16.msra.mxu0 %v4532_v30 }
 0x5c2   : > { %4066 = vmatmul.mubr.msk.bf16.vlgmr.msra.gmra.mxu1 %vm2087_vm3, %v2608_v61  ;;  %3327 = vmatprep.subr.bf16.mxu0 %v4540_v8 }
 0x5c3   : > { %4076 = vmatpush3.bf16.msra.mxu1 %v2735_v63  ;;  %4077 = vmatprep.mubr.msk.bf16.mxu1 %vm4816_vm0, %v4815_v22 }
 0x5c4   : > { %3354 = vmatprep.subr.bf16.mxu1 %v4537_v15 }
 0x5c5   : > { %3328 = vmatpush2.bf16.msra.mxu0 %v4538_v31  ;;  %v4584_v31 = vld [vmem:[#allocation7 + $0xb0] ss:$12 sps:$4 sm:$0xff]  }
 0x5c6   : > { %3329 = vmatprep.subr.bf16.mxu0 %v4546_v21 }
 0x5c9   : > { %3330 = vmatpush2.bf16.msra.mxu0 %v4544_v54 }
 0x5ca   : > { %4078 = vmatmul.mubr.msk.bf16.vlgmr.msra.gmra.mxu1 %vm2087_vm3, %v2732_v58  ;;  %3331 = vmatprep.subr.bf16.mxu0 %v4552_v36  ;;  %v4574_v58 = vld [vmem:[#allocation7 + $0xd8] ss:$12 sps:$4 sm:$0xff]  }
 0x5cb   : > { %3386 = vmatprep.mubr.bf16.mxu1 %v4814_v0  ;;  %3355 = vmatpush1.bf16.msra.mxu1 %v4535_v14  ;;  %v4549_v0 = vld [vmem:[#allocation7 + $0x1fc] ss:$12 sps:$4 sm:$0xff]   ;;  %v4580_v14 = vld [vmem:[#allocation7 + $0xc0] ss:$12 sps:$4 sm:$0xff]   ;;  %v4586_v36 = vld [vmem:[#allocation7 + $0x98] ss:$12 sps:$4 sm:$0xff]  }
 0x5cc   : > { %3356 = vmatprep.subr.bf16.mxu1 %v4543_v11 }
 0x5cd   : > { %3332 = vmatpush2.bf16.msra.mxu0 %v4550_v40  ;;  %v4588_v40 = vld [vmem:[#allocation7 + $0x140] ss:$12 sps:$4 sm:$0xff]  }
 0x5ce   : > { %3333 = vmatprep.subr.bf16.mxu0 %v4558_v41  ;;  %v4590_v41 = vld [vmem:[#allocation7 + $0x218] ss:$12 sps:$4 sm:$0xff]  }
 0x5cf   : > { %3357 = vmatpush1.bf16.msra.mxu1 %v4541_v18 }
 0x5d0   : > { %3358 = vmatprep.subr.bf16.mxu1 %v4549_v0 }
 0x5d1   : > { %3334 = vmatpush2.bf16.msra.mxu0 %v4556_v45  ;;  %v4595_v45 = vld [vmem:[#allocation7 + $0x50] ss:$12 sps:$4 sm:$0xff]  }
 0x5d2   : > { %3335 = vmatprep.subr.bf16.mxu0 %v4564_v57  ;;  %v4598_v57 = vld [vmem:[#allocation7 + $0x38] ss:$12 sps:$4 sm:$0xff]  }
 0x5d3   : > { %3359 = vmatpush1.bf16.msra.mxu1 %v4547_v4 }
 0x5d4   : > { %3360 = vmatprep.subr.bf16.mxu1 %v4555_v38  ;;  %v4587_v38 = vld [vmem:[#allocation7 + $0x230] ss:$12 sps:$4 sm:$0xff]  }
 0x5d5   : > { %3336 = vmatpush2.bf16.msra.mxu0 %v4562_v49  ;;  %v4600_v49 = vld [vmem:[#allocation7 + $0xe0] ss:$12 sps:$4 sm:$0xff]  }
 0x5d6   : > { %3337 = vmatprep.subr.bf16.mxu0 %v4570_v51  ;;  %v4603_v51 = vld [vmem:[#allocation7 + $0xc8] ss:$12 sps:$4 sm:$0xff]  }
 0x5d7   : > { %3361 = vmatpush1.bf16.msra.mxu1 %v4553_v1  ;;  %v4589_v1 = vld [vmem:[#allocation7 + $0x80] ss:$12 sps:$4 sm:$0xff]  }
 0x5d8   : > { %3362 = vmatprep.subr.bf16.mxu1 %v4561_v43  ;;  %v4591_v43 = vld [vmem:[#allocation7 + $0x128] ss:$12 sps:$4 sm:$0xff]  }
 0x5d9   : > { %3338 = vmatpush2.bf16.msra.mxu0 %v4568_v59  ;;  %v2914_v59 = vsub.s32 0, %v5070_v12 }
 0x5da   : > { %3339 = vmatprep.subr.bf16.mxu0 %v4576_v3 }
 0x5db   : > { %3363 = vmatpush1.bf16.msra.mxu1 %v4559_v2  ;;  %v4596_v2 = vld [vmem:[#allocation7 + $0x1e8] ss:$12 sps:$4 sm:$0xff]  }
 0x5dc   : > { %3364 = vmatprep.subr.bf16.mxu1 %v4567_v39  ;;  %v4602_v39 = vld [vmem:[#allocation7 + $0x1b8] ss:$12 sps:$4 sm:$0xff]  }
 0x5dd   : > { %3340 = vmatpush2.bf16.msra.mxu0 %v4574_v58 }
 0x5de   : > { %3341 = vmatprep.subr.bf16.mxu0 %v4582_v9 }
 0x5df   : > { %3365 = vmatpush1.bf16.msra.mxu1 %v4565_v50  ;;  %v4601_v50 = vld [vmem:[#allocation7 + $0x20] ss:$12 sps:$4 sm:$0xff]  }
 0x5e0   : > { %3366 = vmatprep.subr.bf16.mxu1 %v4573_v53  ;;  %v4604_v53 = vld [vmem:[#allocation7 + $0x8] ss:$12 sps:$4 sm:$0xff]  }
 0x5e1   : > { %3342 = vmatpush2.bf16.msra.mxu0 %v4580_v14 }
 0x5e2   : > { %4081 = vmatprep.subr.bf16.mxu0 %v4815_v22 }
 0x5e3   : > { %3367 = vmatpush1.bf16.msra.mxu1 %v4571_v60  ;;  %v2910_v60 = vld [vmem:[%s5342_s3] sm:$0x7] }
 0x5e4   : > { %3368 = vmatprep.subr.bf16.mxu1 %v4579_v52 }
 0x5e7   : > { %3369 = vmatpush1.bf16.msra.mxu1 %v4577_v6 }
 0x5e8   : > { %3958 = vmatprep.subr.bf16.mxu1 %v4583_v10 }
 0x66a   : > { %v5236_v32 = vpop.f32.mrf.mxu1 }
 0x66c   : > { %v4031_v55 = vpop.f32.mrf.mxu1 }
 0x66e   : > { %v5238_v33 = vpop.f32.mrf.mxu1 }
 0x66f   : > { %v4194_v0 = vpack.i.bf16 %v5238_v33, %v5236_v32  ;;  %v4585_v32 = vld [vmem:[#allocation7 + $0x158] ss:$12 sps:$4 sm:$0xff]  }
 0x670   : > { %v4032_v34 = vpop.f32.mrf.mxu1 }
 0x672   : > { %v5240_v35 = vpop.f32.mrf.mxu1 }
 0x674   : > { %v4043_v25 = vpop.f32.mrf.mxu1 }
 0x676   : > { %v5242_v44 = vpop.f32.mrf.mxu1 }
 0x678   : > { %v4044_v47 = vpop.f32.mrf.mxu1 }
 0x679   : > { %v4597_v47 = vld [vmem:[#allocation7 + $0xf8] ss:$12 sps:$4 sm:$0xff]  }
 0x67a   : > { %v2525_v48 = vpop.f32.mrf.mxu1 }
 0x67c   : > { %v4055_v37 = vpop.f32.mrf.mxu1 }
 0x67d   : > { %v4605_v37 = vld [vmem:[#allocation7 + $0x1a0] ss:$12 sps:$4 sm:$0xff]  }
 0x67e   : > { %v2528_v56 = vpop.f32.mrf.mxu1 }
 0x67f   : > { %v4189_v61 = vpack.i.bf16 %v2528_v56, %v2525_v48  ;;  %v4599_v48 = vld [vmem:[#allocation7 + $0x1d0] ss:$12 sps:$4 sm:$0xff]   ;;  %v4606_v56 = vld [vmem:[#allocation7 + $0x188] ss:$12 sps:$4 sm:$0xff]  }
 0x680   : > { %v4056_v62 = vpop.f32.mrf.mxu1 }
 0x681   : > { %4190 = vrot.lane.b32.xlu0 %v4189_v61, %s4817_s21  ;;  %v2918_v61 = vsub.s32 1, %v5070_v12 }
 0x682   : > { %v2646_v63 = vpop.f32.mrf.mxu1 }
 0x683   : > { %v2919_v3 = vrot.slane %v2910_v60, %v2918_v61 }
 0x684   : > { %v4067_v5 = vpop.f32.mrf.mxu1 }
 0x686   : > { %v2649_v7 = vpop.f32.mrf.mxu1 }
 0x688   : > { %v4068_v13 = vpop.f32.mrf.mxu1 }
 0x68a   : > { %v2774_v15 = vpop.f32.mrf.mxu1 }
 0x68c   : > { %v4079_v16 = vpop.f32.mrf.mxu1 }
 0x68e   : > { %v2777_v11 = vpop.f32.mrf.mxu1 }
 0x68f   : > { %v4184_v17 = vpack.i.bf16 %v2777_v11, %v2774_v15 }
 0x690   : > { %v4080_v18 = vpop.f32.mrf.mxu1 }
 0x691   : > { %4185 = vrot.lane.b32.xlu1 %v4184_v17, %s4817_s21 }
 0x695   : > { %4195 = vrot.lane.b32.xlu1 %v4194_v0, %s4817_s21  ;;  %v2922_v0 = vsub.s32 2, %v5070_v12 }
 0x6f3   : > { %v4191_v19 = vpop.permute.xlu0 %4190 }
 0x6f4   : > { %v4193_v20 = vunpack.i.h.bf16 %v4191_v19  ;;  %v4192_v4 = vunpack.i.l.bf16 %v4191_v19 }
 0x6f6   : > { %v2807_v23 = vsel %vm2035_vm1, %v5240_v35, %v4192_v4  ;;  %v2808_v24 = vsel %vm2035_vm1, %v5242_v44, %v4193_v20  ;;  %v4594_v44 = vld [vmem:[#allocation7 + $0x110] ss:$12 sps:$4 sm:$0xff]   ;;  %v2923_v20 = vrot.slane %v2910_v60, %v2922_v0 }
 0x6f7   : > { %v2812_v26 = vpack.c.bf16 %v2808_v24, %v2807_v23 }
 0x6f9   : > { %3343 = vmatprep.mubr.bf16.mxu0 %v2812_v26 }
 0x703   : > { %v4186_v27 = vpop.permute.xlu1 %4185 }
 0x704   : > { %v4188_v28 = vunpack.i.h.bf16 %v4186_v27  ;;  %v4187_v29 = vunpack.i.l.bf16 %v4186_v27 }
 0x706   : > { %v2810_v30 = vsel %vm2035_vm1, %v2649_v7, %v4188_v28  ;;  %v2809_v8 = vsel %vm2035_vm1, %v2646_v63, %v4187_v29  ;;  %v2915_v63 = vrot.slane %v2910_v60, %v2914_v59 }
 0x707   : > { %v5256_v21 = vpack.c.bf16 %v2810_v30, %v2809_v8  ;;  %v4196_v54 = vpop.permute.xlu1 %4195 }
 0x708   : > { %v4198_v55 = vunpack.i.h.bf16 %v4196_v54  ;;  %v4197_v33 = vunpack.i.l.bf16 %v4196_v54 }
 0x709   : > { %3387 = vmatmul.mubr.bf16.vlgmr.msra.gmra.mxu1 %v5256_v21 }
 0x70a   : > { %v2806_v34 = vsel %vm2035_vm1, %v5130_v46, %v4198_v55  ;;  %v2805_v35 = vsel %vm2035_vm1, %v5128_v42, %v4197_v33  ;;  %3959 = vmatpush3.bf16.msra.mxu1 %v4584_v31  ;;  %3429 = vmatprep.mubr.bf16.mxu1 %v2812_v26  ;;  %v4592_v42 = vld [vmem:[#allocation7 + $0x68] ss:$12 sps:$4 sm:$0xff]   ;;  %v4593_v46 = vld [vmem:[#allocation7 + $0x200] ss:$12 sps:$4 sm:$0xff]  }
 0x70b   : > { %v2811_v25 = vpack.c.bf16 %v2806_v34, %v2805_v35  ;;  %3960 = vmatprep.subr.bf16.mxu1 %v4585_v32 }
 0x70d   : > { %3344 = vmatmul.mubr.bf16.vlgmr.msra.gmra.mxu0 %v2811_v25 }
 0x70e   : > { %3961 = vmatpush3.bf16.msra.mxu1 %v4586_v36  ;;  %4082 = vmatpush3.bf16.msra.mxu0 %v4587_v38 }
 0x70f   : > { %3962 = vmatprep.subr.bf16.mxu1 %v4588_v40  ;;  %4083 = vmatprep.subr.bf16.mxu0 %v4815_v22 }
 0x710   : > { %4097 = vmatprep.mubr.msk.bf16.mxu0 %vm4816_vm0, %v4815_v22 }
 0x712   : > { %3963 = vmatpush3.bf16.msra.mxu1 %v4589_v1  ;;  %4084 = vmatpush3.bf16.msra.mxu0 %v4590_v41 }
 0x713   : > { %3964 = vmatprep.subr.bf16.mxu1 %v4591_v43  ;;  %4085 = vmatprep.subr.bf16.mxu0 %v4815_v22 }
 0x716   : > { %3965 = vmatpush3.bf16.msra.mxu1 %v4592_v42  ;;  %4086 = vmatpush3.bf16.msra.mxu0 %v4593_v46 }
 0x717   : > { %3966 = vmatprep.subr.bf16.mxu1 %v4594_v44  ;;  %4087 = vmatprep.subr.bf16.mxu0 %v4815_v22 }
 0x71a   : > { %3967 = vmatpush3.bf16.msra.mxu1 %v4595_v45  ;;  %4088 = vmatpush3.bf16.msra.mxu0 %v4596_v2 }
 0x71b   : > { %3968 = vmatprep.subr.bf16.mxu1 %v4597_v47  ;;  %4089 = vmatprep.subr.bf16.mxu0 %v4815_v22 }
 0x71e   : > { %3969 = vmatpush3.bf16.msra.mxu1 %v4598_v57  ;;  %4090 = vmatpush3.bf16.msra.mxu0 %v4599_v48 }
 0x71f   : > { %3970 = vmatprep.subr.bf16.mxu1 %v4600_v49  ;;  %4091 = vmatprep.subr.bf16.mxu0 %v4815_v22 }
 0x722   : > { %3971 = vmatpush3.bf16.msra.mxu1 %v4601_v50  ;;  %4092 = vmatpush3.bf16.msra.mxu0 %v4602_v39 }
 0x723   : > { %3972 = vmatprep.subr.bf16.mxu1 %v4603_v51  ;;  %4093 = vmatprep.subr.bf16.mxu0 %v4815_v22 }
 0x726   : > { %3973 = vmatpush3.bf16.msra.mxu1 %v4604_v53  ;;  %4094 = vmatpush3.bf16.msra.mxu0 %v4605_v37 }
 0x727   : > { %4095 = vmatprep.subr.bf16.mxu0 %v4815_v22 }
 0x729   : > { %3430 = vmatmul.mubr.bf16.vlgmr.msra.gmra.mxu1 %v2811_v25 }
 0x72a   : > { %4096 = vmatpush3.bf16.msra.mxu0 %v4606_v56 }
 0x72d   : > { %4098 = vmatmul.mubr.bf16.vlgmr.msra.gmra.mxu0 %v5256_v21 }
 0x7c9   : > { %v3388_v62 = vpop.f32.mrf.mxu1 }
 0x7cb   : > { %v3390_v52 = vpop.f32.mrf.mxu1 }
 0x7cd   : > { %v3345_v5 = vpop.f32.mrf.mxu0  ;;  %v3392_v9 = vpop.f32.mrf.mxu1 }
 0x7ce   : > { %v3346_v58 = vadd.f32 %v3345_v5, %v2915_v63 }
 0x7cf   : > { %v3347_v22 = vpop.f32.mrf.mxu0  ;;  %v3394_v17 = vpop.f32.mrf.mxu1 }
 0x7d0   : > { %v3389_v6 = vadd.f32 %v3388_v62, %v3346_v58  ;;  %v3348_v7 = vadd.f32 %v3347_v22, %v2919_v3 }
 0x7d1   : > { %v3349_v10 = vpop.f32.mrf.mxu0 }
 0x7d2   : > { %3479 = vst [vmem:[%s5280_s6] sm:$0xff] %v3389_v6  ;;  %v3391_v13 = vadd.f32 %v3390_v52, %v3348_v7  ;;  %v3350_v14 = vadd.f32 %v3349_v10, %v2915_v63 }
 0x7d3   : > { %v3351_v15 = vpop.f32.mrf.mxu0 }
 0x7d4   : > { %3480 = vst [vmem:[%s5280_s6 + $0x8] sm:$0xff] %v3391_v13  ;;  %v3393_v16 = vadd.f32 %v3392_v9, %v3350_v14  ;;  %v3352_v11 = vadd.f32 %v3351_v15, %v2919_v3 }
 0x7d6   : > { %3482 = vst [vmem:[%s5280_s6 + $0x18] sm:$0xff] %v3393_v16  ;;  %v3395_v18 = vadd.f32 %v3394_v17, %v3352_v11 }
 0x7d8   : > { %3483 = vst [vmem:[%s5280_s6 + $0x20] sm:$0xff] %v3395_v18 }
 0x7e9   : > { %v3974_v19 = vpop.f32.mrf.mxu1 }
 0x7eb   : > { %v3975_v4 = vpop.f32.mrf.mxu1 }
 0x7ec   : > { %v3976_v23 = vadd.f32 %v3975_v4, %v3974_v19 }
 0x7ed   : > { %v3977_v24 = vpop.f32.mrf.mxu1  ;;  %v3472_v26 = vpop.f32.mrf.mxu0 }
 0x7ee   : > { %v3432_v27 = vadd.f32 %v3976_v23, %v2923_v20 }
 0x7ef   : > { %v3978_v28 = vpop.f32.mrf.mxu1  ;;  %v4099_v29 = vpop.f32.mrf.mxu0 }
 0x7f0   : > { %v3473_v30 = vadd.f32 %v3472_v26, %v3432_v27  ;;  %v3979_v8 = vadd.f32 %v3978_v28, %v3977_v24 }
 0x7f1   : > { %v3475_v31 = vpop.f32.mrf.mxu0 }
 0x7f2   : > { %3481 = vst [vmem:[%s5280_s6 + $0x10] sm:$0xff] %v3473_v30  ;;  %v3435_v12 = vadd.f32 %v3979_v8, %v2923_v20 }
 0x7f3   : > { %v4100_v21 = vpop.f32.mrf.mxu0 }
 0x7f4   : > { %v3476_v54 = vadd.f32 %v3475_v31, %v3435_v12 }
 0x7f6   : > { %3484 = vst [vmem:[%s5280_s6 + $0x28] sm:$0xff] %v3476_v54 }
 0x7f7   : > { %4748 = shalt.err (!%p4745_p9)
}
 0x7f8   : > { %s4749_s12 = scalar_lea.hbm %s5295_s27, 768  ;;  %s4753_s21 = scalar_lea.hbm %s5343_s4, 1536 }
 0x7f9   : > { %p4750_p13 = scmp.ne.s32.totalorder %s5295_s27, %s4749_s12  ;;  %p4754_p4 = scmp.lt.s32.totalorder %s5295_s27, %s5343_s4 }
 0x7fa   : > { %p4755_p8 = scmp.lt.s32.totalorder %s4753_s21, %s4749_s12 }
 0x7fb   : > { %p4751_p5 = pnand %p4750_p13, %p5363_p10 }
 0x7fc   : > { %p4756_p7 = por %p4755_p8, %p4754_p4 }
 0x7fd   : > { %p4752_p0 = pneg %p4751_p5 }
 0x7ff   : > { %p4757_p11 = pnand %p4756_p7, %p4752_p0 }
 0x801   : > { %4760 = shalt.err (!%p4757_p11)
}
 0x802   : > { %s4819_s6 = smov 384   ;;  %s4820_s9 = smov 24  }
 0x803   : > { %4115 = dma.vmem_to_hbm [thread:$0]  (%p5363_p10), %s5289_s8, 768, %s5295_s27, %s3486_s30, %s4819_s6, %s4819_s6, %s4820_s9  }
 0x804 PF: > { %s3514_s28 = sand.u32 1, %s4791_s15   ;;  %p5364_p1 = scmp.ne.s32.totalorder %s5349_s22, 0 }
 0x805   : > { %p5365_p2 = scmp.ge.s32.totalorder %s4803_s18, 2  ;;  %s3515_s26 = scalar_lea.sflag [#allocation4], %s3514_s28 }
 0x807   : > { %p4129_p6 = pnand %p5365_p2, %p5364_p1 }
 0x809   : > { %p4130_p12 = pneg %p4129_p6 }
 0x80b   : > { %4786 = dma.done.wait (%p4130_p12), %s3515_s26, 768  }
 0x80c   : > { %4788 = vsyncadd (%p4130_p12), %s3515_s26, 4294966528  ;;  %p18_p3 = scmp.ge.s32.totalorder %s4918_s13, 4   ;;  %s5366_s15 = smov %s4795_s16 }
 0x80d   : > { %s5367_s16 = smov %s4799_s17  ;;  %s5368_s17 = smov %s4927_s24 }
 0x80e   : > { %s5369_s18 = smov %s4918_s13  ;;  %20 = sbr.rel (!%p18_p3) target bundleno = 6 (0x6), region = 89 }
 0x813   :  { %3520 = vsyncpa [#allocation3], 1 }
 0x814   :  { %3522 = vsyncpa [#allocation3 + $0x1], 1 }
 0x815   :  { %3523 = vsyncpa [#allocation6], 1 }
 0x816   :  { %3524 = vsyncpa [#allocation4], 1 }
 0x817   :  { %3526 = vsyncpa [#allocation4 + $0x1], 1 }

</bundles_post_ra>
